<compile_context>
chip_gen: v5e
topology: v5e:2x2
jax: 0.10.0
libtpu: 0.0.40
codegen_flags: <defaults>
</compile_context>

<pallas_src>
import jax
import jax.numpy as jnp
from jax import lax
from jax.experimental import pallas as pl
from jax.experimental.pallas import tpu as pltpu


# ----------------------------- fused LSTM + FC kernel -----------------------------
def _build_kernel(num_layers, T, Bp, H, O, mm_dtype, t_chunk):
    """Kernel closing over static sizes.

    Ref layout (positional): x2d, (w_ih, w_hh, b) * num_layers, w_fc, b_fc,
                             out, gx_scratch[, seq_scratch]
    """
    H4 = 4 * H
    n_chunks = -(-T // t_chunk)
    n_in = 3 + 3 * num_layers

    def kernel(*refs):
        x_ref = refs[0]                          # (T*Bp, D)   mm_dtype, rows (t, b)
        layer_refs = refs[1:1 + 3 * num_layers]  # (D,4H)/(H,4H) mm_dtype, (1,4H) f32
        wfc_ref = refs[1 + 3 * num_layers]       # (H, O)      mm_dtype
        bfc_ref = refs[2 + 3 * num_layers]       # (1, O)      f32
        out_ref = refs[n_in]                     # (Bp, O)     f32
        gx_scr = refs[n_in + 1]                  # (t_chunk*Bp, 4H) f32
        seq_scr = refs[n_in + 2] if num_layers > 1 else None  # (T*Bp, H) mm_dtype

        h = jnp.zeros((Bp, H), jnp.float32)
        for layer in range(num_layers):
            wih_ref = layer_refs[3 * layer + 0]
            whh_ref = layer_refs[3 * layer + 1]
            b_ref = layer_refs[3 * layer + 2]
            last_layer = (layer == num_layers - 1)
            src_ref = x_ref if layer == 0 else seq_scr
            bias = b_ref[...]                    # hoisted once per layer

            h = jnp.zeros((Bp, H), jnp.float32)
            c = jnp.zeros((Bp, H), jnp.float32)

            for ck in range(n_chunks):           # static chunk loop over time
                t0 = ck * t_chunk
                tlen = min(t_chunk, T - t0)
                rows = tlen * Bp

                # ---- hoisted input projection for this chunk: one MXU matmul ----
                gx_scr[pl.ds(0, rows), :] = (
                    jnp.dot(src_ref[pl.ds(t0 * Bp, rows), :], wih_ref[...],
                            preferred_element_type=jnp.float32)
                    + bias)

                # ---- serial recurrence: only h @ W_hh + cell update per step ----
                def step(t, carry, _t0=t0, _last=last_layer):
                    h, c = carry
                    r0 = pl.multiple_of(t * Bp, Bp)            # sublane-aligned
                    gates = gx_scr[pl.ds(r0, Bp), :] + jnp.dot(
                        h.astype(mm_dtype), whh_ref[...],
                        preferred_element_type=jnp.float32)     # (Bp, 4H), [i|f|o|g]
                    ifo = jax.nn.sigmoid(gates[:, :3 * H])      # one wide EUP push
                    g_g = jnp.tanh(gates[:, 3 * H:])
                    c_new = ifo[:, H:2 * H] * c + ifo[:, :H] * g_g
                    h_new = ifo[:, 2 * H:3 * H] * jnp.tanh(c_new)
                    if not _last:
                        rs = pl.multiple_of(t * Bp + _t0 * Bp, Bp)
                        seq_scr[pl.ds(rs, Bp), :] = h_new.astype(seq_scr.dtype)
                    return h_new, c_new

                unroll = True if tlen <= 16 else 8
                h, c = lax.fori_loop(0, tlen, step, (h, c), unroll=unroll)

        # ---- fused final Linear on the last timestep's hidden state ----
        out_ref[...] = (jnp.dot(h.astype(mm_dtype), wfc_ref[...],
                                preferred_element_type=jnp.float32)
                        + bfc_ref[...])

    return kernel


# ------------------------------- weight preparation --------------------------------
def _prep_params(params, mm_dtype):
    """PyTorch-layout params -> kernel layout.

    Transpose to (D,4H)/(H,4H)/(H,O), fuse b_ih+b_hh, reorder gate columns from
    PyTorch [i|f|g|o] to [i|f|o|g], cast matmul operands to `mm_dtype`.
    """
    H = params["layers"][0]["w_hh"].shape[1]

    def reorder(w):  # (..., 4H): i|f|g|o -> i|f|o|g
        return jnp.concatenate(
            [w[..., :2 * H], w[..., 3 * H:], w[..., 2 * H:3 * H]], axis=-1)

    layers = []
    for lp in params["layers"]:
        w_ih = reorder(jnp.transpose(lp["w_ih"])).astype(mm_dtype)       # (D, 4H)
        w_hh = reorder(jnp.transpose(lp["w_hh"])).astype(mm_dtype)       # (H, 4H)
        b = reorder((lp["b_ih"] + lp["b_hh"]).reshape(1, 4 * H)).astype(jnp.float32)
        layers.append((w_ih, w_hh, b))
    w_fc = jnp.transpose(params["w_fc"]).astype(mm_dtype)                # (H, O)
    b_fc = params["b_fc"].reshape(1, -1).astype(jnp.float32)             # (1, O)
    return layers, w_fc, b_fc


# --------------------------------- forward wrapper ---------------------------------
def lstm_forward(params, x, *, mm_dtype=jnp.bfloat16, t_chunk=None):
    """x: (B, T, input_size) float32  ->  (B, output_size) float32."""
    x = x.astype(jnp.float32)
    B, T, D = x.shape
    num_layers = len(params["layers"])
    H = params["layers"][0]["w_hh"].shape[1]
    H4 = 4 * H
    O = params["w_fc"].shape[0]
    if t_chunk is None:
        t_chunk = min(T, 32)                     # bounds gx scratch for long sequences
    t_chunk = min(t_chunk, T)

    # Pad batch to a sublane multiple so every (Bp, .) row window is aligned.
    # (For throughput, batch more real sequences toward the MXU row tile instead
    #  of padding — recurrence wall time is ~flat in Bp up to ~128/256 rows.)
    Bp = max(8, ((B + 7) // 8) * 8)
    xt = jnp.transpose(x, (1, 0, 2))             # (T, B, D): time-major
    if Bp != B:
        xt = jnp.pad(xt, ((0, 0), (0, Bp - B), (0, 0)))
    x2d = xt.reshape(T * Bp, D).astype(mm_dtype)  # rows = (t, b) row-major

    layers, w_fc, b_fc = _prep_params(params, mm_dtype)

    vmem = pl.BlockSpec(memory_space=pltpu.MemorySpace.VMEM)
    args = [x2d]
    in_specs = [vmem]
    for (w_ih, w_hh, b) in layers:
        args += [w_ih, w_hh, b]
        in_specs += [vmem, vmem, vmem]
    args += [w_fc, b_fc]
    in_specs += [vmem, vmem]

    scratch_shapes = [pltpu.VMEM((t_chunk * Bp, H4), jnp.float32)]  # chunked gx cache
    if num_layers > 1:
        scratch_shapes.append(pltpu.VMEM((T * Bp, H), mm_dtype))    # inter-layer seq

    kernel = _build_kernel(num_layers, T, Bp, H, O, mm_dtype, t_chunk)

    out = pl.pallas_call(
        kernel,
        out_shape=jax.ShapeDtypeStruct((Bp, O), jnp.float32),
        in_specs=in_specs,
        out_specs=vmem,
        scratch_shapes=scratch_shapes,
        compiler_params=pltpu.CompilerParams(
            vmem_limit_bytes=32 * 1024 * 1024),
    )(*args)
    return out[:B]


# --------------------------------- parameter setup ---------------------------------
def init_params(key, input_size, hidden_size, num_layers, output_size):
    """PyTorch-layout params with U(-1/sqrt(H), 1/sqrt(H)) init, gate order i|f|g|o."""
    H = hidden_size
    bound = 1.0 / (H ** 0.5)
    params = {"layers": []}
    for layer in range(num_layers):
        D = input_size if layer == 0 else H
        key, k1, k2, k3, k4 = jax.random.split(key, 5)
        params["layers"].append({
            "w_ih": jax.random.uniform(k1, (4 * H, D), jnp.float32, -bound, bound),
            "w_hh": jax.random.uniform(k2, (4 * H, H), jnp.float32, -bound, bound),
            "b_ih": jax.random.uniform(k3, (4 * H,), jnp.float32, -bound, bound),
            "b_hh": jax.random.uniform(k4, (4 * H,), jnp.float32, -bound, bound),
        })
    key, k5, k6 = jax.random.split(key, 3)
    params["w_fc"] = jax.random.uniform(k5, (output_size, H), jnp.float32, -bound, bound)
    params["b_fc"] = jax.random.uniform(k6, (output_size,), jnp.float32, -bound, bound)
    return params


# -------------------------------- pure-JAX reference --------------------------------
def lstm_forward_ref(params, x):
    x = x.astype(jnp.float32)
    B = x.shape[0]
    inp = x
    for lp in params["layers"]:
        H = lp["w_hh"].shape[1]
        h = jnp.zeros((B, H), jnp.float32)
        c = jnp.zeros((B, H), jnp.float32)
        outs = []
        for t in range(inp.shape[1]):
            gates = (inp[:, t, :] @ lp["w_ih"].T + h @ lp["w_hh"].T
                     + lp["b_ih"] + lp["b_hh"])
            i_g = jax.nn.sigmoid(gates[:, 0 * H:1 * H])
            f_g = jax.nn.sigmoid(gates[:, 1 * H:2 * H])
            g_g = jnp.tanh(gates[:, 2 * H:3 * H])
            o_g = jax.nn.sigmoid(gates[:, 3 * H:4 * H])
            c = f_g * c + i_g * g_g
            h = o_g * jnp.tanh(c)
            outs.append(h)
        inp = jnp.stack(outs, axis=1)
    return inp[:, -1, :] @ params["w_fc"].T + params["b_fc"]


if __name__ == "__main__":
    input_size, hidden_size, num_layers, output_size = 4, 32, 2, 8
    batch, seq = 2, 8

    key = jax.random.PRNGKey(0)
    kp, kx = jax.random.split(key)
    params = init_params(kp, input_size, hidden_size, num_layers, output_size)
    x = jax.random.normal(kx, (batch, seq, input_size), jnp.float32)

    ref = jax.block_until_ready(lstm_forward_ref(params, x))

    # Exact path (f32 MXU operands) — tight tolerance against the f32 reference.
    out_f32 = jax.block_until_ready(lstm_forward(params, x, mm_dtype=jnp.float32))
    assert out_f32.shape == (batch, output_size), out_f32.shape
    assert jnp.allclose(out_f32, ref, atol=1e-4, rtol=1e-4), (
        f"f32 max abs err {jnp.max(jnp.abs(out_f32 - ref))}")

    # Fast path (bf16 MXU operands, f32 accumulation / activations).
    out_bf16 = jax.block_until_ready(lstm_forward(params, x, mm_dtype=jnp.bfloat16))
    assert out_bf16.shape == (batch, output_size), out_bf16.shape
    assert jnp.allclose(out_bf16, ref, atol=5e-2, rtol=5e-2), (
        f"bf16 max abs err {jnp.max(jnp.abs(out_bf16 - ref))}")

    print("KERNEL_OK")
</pallas_src>

<mosaic_0001>
module attributes {stable_mosaic.version = 11 : i64} {
  func.func @kernel(%arg0: memref<64x4xf32, #tpu.memory_space<vmem>>, %arg1: memref<4x128xf32, #tpu.memory_space<vmem>>, %arg2: memref<32x128xf32, #tpu.memory_space<vmem>>, %arg3: memref<1x128xf32, #tpu.memory_space<vmem>>, %arg4: memref<32x128xf32, #tpu.memory_space<vmem>>, %arg5: memref<32x128xf32, #tpu.memory_space<vmem>>, %arg6: memref<1x128xf32, #tpu.memory_space<vmem>>, %arg7: memref<32x8xf32, #tpu.memory_space<vmem>>, %arg8: memref<1x8xf32, #tpu.memory_space<vmem>>, %arg9: memref<8x8xf32, #tpu.memory_space<vmem>>, %arg10: memref<64x128xf32, #tpu.memory_space<vmem>>, %arg11: memref<64x32xf32, #tpu.memory_space<vmem>>) attributes {dimension_semantics = [], scalar_prefetch = 0 : i64, scratch_operands = 2 : i64, tpu.core_type = #tpu.core_type<tc>} {
    %c0 = arith.constant 0 : index
    %c0_0 = arith.constant 0 : index
    %0 = vector.load %arg3[%c0, %c0_0] : memref<1x128xf32, #tpu.memory_space<vmem>>, vector<1x128xf32>
    %cst = arith.constant 0.000000e+00 : f32
    %1 = vector.broadcast %cst : f32 to vector<8x32xf32>
    %cst_1 = arith.constant 0.000000e+00 : f32
    %2 = vector.broadcast %cst_1 : f32 to vector<8x32xf32>
    %c0_2 = arith.constant 0 : index
    %c0_3 = arith.constant 0 : index
    %3 = vector.load %arg0[%c0_2, %c0_3] : memref<64x4xf32, #tpu.memory_space<vmem>>, vector<64x4xf32>
    %c0_4 = arith.constant 0 : index
    %c0_5 = arith.constant 0 : index
    %4 = vector.load %arg1[%c0_4, %c0_5] : memref<4x128xf32, #tpu.memory_space<vmem>>, vector<4x128xf32>
    %cst_6 = arith.constant dense<0.000000e+00> : vector<64x128xf32>
    %5 = tpu.matmul %3, %4, %cst_6 {dimension_numbers = #tpu.dot_dimension_numbers<[1], [0], [0], [1], [0, 0, 1, 1], [], []>} : vector<64x4xf32>, vector<4x128xf32>, vector<64x128xf32> -> vector<64x128xf32>
    %6 = vector.broadcast %0 : vector<1x128xf32> to vector<64x128xf32>
    %7 = arith.addf %5, %6 : vector<64x128xf32>
    %c0_7 = arith.constant 0 : index
    %c0_8 = arith.constant 0 : index
    %8 = vector.load %arg10[%c0_7, %c0_8] : memref<64x128xf32, #tpu.memory_space<vmem>>, vector<64x128xf32>
    tpu.vector_store %arg10[%c0_7, %c0_8], %7 {strides = array<i32>} : memref<64x128xf32, #tpu.memory_space<vmem>>, vector<64x128xf32>,
    %c0_i32 = arith.constant 0 : i32
    %c8_i32 = arith.constant 8 : i32
    %9 = arith.muli %c0_i32, %c8_i32 : i32
    %10 = tpu.assume_multiple %9, 8 : i32
    %11 = arith.index_cast %10 : i32 to index
    %c0_9 = arith.constant 0 : index
    %12 = vector.load %arg10[%11, %c0_9] : memref<64x128xf32, #tpu.memory_space<vmem>>, vector<8x128xf32>
    %c0_10 = arith.constant 0 : index
    %c0_11 = arith.constant 0 : index
    %13 = vector.load %arg2[%c0_10, %c0_11] : memref<32x128xf32, #tpu.memory_space<vmem>>, vector<32x128xf32>
    %cst_12 = arith.constant dense<0.000000e+00> : vector<8x128xf32>
    %14 = tpu.matmul %1, %13, %cst_12 {dimension_numbers = #tpu.dot_dimension_numbers<[1], [0], [0], [1], [0, 0, 1, 1], [], []>} : vector<8x32xf32>, vector<32x128xf32>, vector<8x128xf32> -> vector<8x128xf32>
    %15 = arith.addf %12, %14 : vector<8x128xf32>
    %16 = vector.extract_strided_slice %15 {offsets = [0, 0], sizes = [8, 96], strides = [1, 1]} : vector<8x128xf32> to vector<8x96xf32>
    %17 = arith.negf %16 : vector<8x96xf32>
    %18 = math.exp %17 : vector<8x96xf32>
    %cst_13 = arith.constant 1.000000e+00 : f32
    %19 = vector.broadcast %cst_13 : f32 to vector<8x96xf32>
    %20 = arith.addf %19, %18 : vector<8x96xf32>
    %21 = arith.divf %19, %20 : vector<8x96xf32>
    %22 = vector.extract_strided_slice %15 {offsets = [0, 96], sizes = [8, 32], strides = [1, 1]} : vector<8x128xf32> to vector<8x32xf32>
    %23 = math.tanh %22 : vector<8x32xf32>
    %24 = vector.extract_strided_slice %21 {offsets = [0, 32], sizes = [8, 32], strides = [1, 1]} : vector<8x96xf32> to vector<8x32xf32>
    %25 = arith.mulf %24, %2 : vector<8x32xf32>
    %26 = vector.extract_strided_slice %21 {offsets = [0, 0], sizes = [8, 32], strides = [1, 1]} : vector<8x96xf32> to vector<8x32xf32>
    %27 = arith.mulf %26, %23 : vector<8x32xf32>
    %28 = arith.addf %25, %27 : vector<8x32xf32>
    %29 = vector.extract_strided_slice %21 {offsets = [0, 64], sizes = [8, 32], strides = [1, 1]} : vector<8x96xf32> to vector<8x32xf32>
    %30 = math.tanh %28 : vector<8x32xf32>
    %31 = arith.mulf %29, %30 : vector<8x32xf32>
    %c8_i32_14 = arith.constant 8 : i32
    %32 = arith.muli %c0_i32, %c8_i32_14 : i32
    %c0_i32_15 = arith.constant 0 : i32
    %33 = arith.addi %32, %c0_i32_15 : i32
    %34 = tpu.assume_multiple %33, 8 : i32
    %35 = arith.index_cast %34 : i32 to index
    %c0_16 = arith.constant 0 : index
    %36 = vector.load %arg11[%35, %c0_16] : memref<64x32xf32, #tpu.memory_space<vmem>>, vector<8x32xf32>
    tpu.vector_store %arg11[%35, %c0_16], %31 {strides = array<i32>} : memref<64x32xf32, #tpu.memory_space<vmem>>, vector<8x32xf32>,
    %c1_i32 = arith.constant 1 : i32
    %c8_i32_17 = arith.constant 8 : i32
    %37 = arith.muli %c1_i32, %c8_i32_17 : i32
    %38 = tpu.assume_multiple %37, 8 : i32
    %39 = arith.index_cast %38 : i32 to index
    %c0_18 = arith.constant 0 : index
    %40 = vector.load %arg10[%39, %c0_18] : memref<64x128xf32, #tpu.memory_space<vmem>>, vector<8x128xf32>
    %c0_19 = arith.constant 0 : index
    %c0_20 = arith.constant 0 : index
    %41 = vector.load %arg2[%c0_19, %c0_20] : memref<32x128xf32, #tpu.memory_space<vmem>>, vector<32x128xf32>
    %cst_21 = arith.constant dense<0.000000e+00> : vector<8x128xf32>
    %42 = tpu.matmul %31, %41, %cst_21 {dimension_numbers = #tpu.dot_dimension_numbers<[1], [0], [0], [1], [0, 0, 1, 1], [], []>} : vector<8x32xf32>, vector<32x128xf32>, vector<8x128xf32> -> vector<8x128xf32>
    %43 = arith.addf %40, %42 : vector<8x128xf32>
    %44 = vector.extract_strided_slice %43 {offsets = [0, 0], sizes = [8, 96], strides = [1, 1]} : vector<8x128xf32> to vector<8x96xf32>
    %45 = arith.negf %44 : vector<8x96xf32>
    %46 = math.exp %45 : vector<8x96xf32>
    %cst_22 = arith.constant 1.000000e+00 : f32
    %47 = vector.broadcast %cst_22 : f32 to vector<8x96xf32>
    %48 = arith.addf %47, %46 : vector<8x96xf32>
    %49 = arith.divf %47, %48 : vector<8x96xf32>
    %50 = vector.extract_strided_slice %43 {offsets = [0, 96], sizes = [8, 32], strides = [1, 1]} : vector<8x128xf32> to vector<8x32xf32>
    %51 = math.tanh %50 : vector<8x32xf32>
    %52 = vector.extract_strided_slice %49 {offsets = [0, 32], sizes = [8, 32], strides = [1, 1]} : vector<8x96xf32> to vector<8x32xf32>
    %53 = arith.mulf %52, %28 : vector<8x32xf32>
    %54 = vector.extract_strided_slice %49 {offsets = [0, 0], sizes = [8, 32], strides = [1, 1]} : vector<8x96xf32> to vector<8x32xf32>
    %55 = arith.mulf %54, %51 : vector<8x32xf32>
    %56 = arith.addf %53, %55 : vector<8x32xf32>
    %57 = vector.extract_strided_slice %49 {offsets = [0, 64], sizes = [8, 32], strides = [1, 1]} : vector<8x96xf32> to vector<8x32xf32>
    %58 = math.tanh %56 : vector<8x32xf32>
    %59 = arith.mulf %57, %58 : vector<8x32xf32>
    %c8_i32_23 = arith.constant 8 : i32
    %60 = arith.muli %c1_i32, %c8_i32_23 : i32
    %c0_i32_24 = arith.constant 0 : i32
    %61 = arith.addi %60, %c0_i32_24 : i32
    %62 = tpu.assume_multiple %61, 8 : i32
    %63 = arith.index_cast %62 : i32 to index
    %c0_25 = arith.constant 0 : index
    %64 = vector.load %arg11[%63, %c0_25] : memref<64x32xf32, #tpu.memory_space<vmem>>, vector<8x32xf32>
    tpu.vector_store %arg11[%63, %c0_25], %59 {strides = array<i32>} : memref<64x32xf32, #tpu.memory_space<vmem>>, vector<8x32xf32>,
    %c2_i32 = arith.constant 2 : i32
    %c8_i32_26 = arith.constant 8 : i32
    %65 = arith.muli %c2_i32, %c8_i32_26 : i32
    %66 = tpu.assume_multiple %65, 8 : i32
    %67 = arith.index_cast %66 : i32 to index
    %c0_27 = arith.constant 0 : index
    %68 = vector.load %arg10[%67, %c0_27] : memref<64x128xf32, #tpu.memory_space<vmem>>, vector<8x128xf32>
    %c0_28 = arith.constant 0 : index
    %c0_29 = arith.constant 0 : index
    %69 = vector.load %arg2[%c0_28, %c0_29] : memref<32x128xf32, #tpu.memory_space<vmem>>, vector<32x128xf32>
    %cst_30 = arith.constant dense<0.000000e+00> : vector<8x128xf32>
    %70 = tpu.matmul %59, %69, %cst_30 {dimension_numbers = #tpu.dot_dimension_numbers<[1], [0], [0], [1], [0, 0, 1, 1], [], []>} : vector<8x32xf32>, vector<32x128xf32>, vector<8x128xf32> -> vector<8x128xf32>
    %71 = arith.addf %68, %70 : vector<8x128xf32>
    %72 = vector.extract_strided_slice %71 {offsets = [0, 0], sizes = [8, 96], strides = [1, 1]} : vector<8x128xf32> to vector<8x96xf32>
    %73 = arith.negf %72 : vector<8x96xf32>
    %74 = math.exp %73 : vector<8x96xf32>
    %cst_31 = arith.constant 1.000000e+00 : f32
    %75 = vector.broadcast %cst_31 : f32 to vector<8x96xf32>
    %76 = arith.addf %75, %74 : vector<8x96xf32>
    %77 = arith.divf %75, %76 : vector<8x96xf32>
    %78 = vector.extract_strided_slice %71 {offsets = [0, 96], sizes = [8, 32], strides = [1, 1]} : vector<8x128xf32> to vector<8x32xf32>
    %79 = math.tanh %78 : vector<8x32xf32>
    %80 = vector.extract_strided_slice %77 {offsets = [0, 32], sizes = [8, 32], strides = [1, 1]} : vector<8x96xf32> to vector<8x32xf32>
    %81 = arith.mulf %80, %56 : vector<8x32xf32>
    %82 = vector.extract_strided_slice %77 {offsets = [0, 0], sizes = [8, 32], strides = [1, 1]} : vector<8x96xf32> to vector<8x32xf32>
    %83 = arith.mulf %82, %79 : vector<8x32xf32>
    %84 = arith.addf %81, %83 : vector<8x32xf32>
    %85 = vector.extract_strided_slice %77 {offsets = [0, 64], sizes = [8, 32], strides = [1, 1]} : vector<8x96xf32> to vector<8x32xf32>
    %86 = math.tanh %84 : vector<8x32xf32>
    %87 = arith.mulf %85, %86 : vector<8x32xf32>
    %c8_i32_32 = arith.constant 8 : i32
    %88 = arith.muli %c2_i32, %c8_i32_32 : i32
    %c0_i32_33 = arith.constant 0 : i32
    %89 = arith.addi %88, %c0_i32_33 : i32
    %90 = tpu.assume_multiple %89, 8 : i32
    %91 = arith.index_cast %90 : i32 to index
    %c0_34 = arith.constant 0 : index
    %92 = vector.load %arg11[%91, %c0_34] : memref<64x32xf32, #tpu.memory_space<vmem>>, vector<8x32xf32>
    tpu.vector_store %arg11[%91, %c0_34], %87 {strides = array<i32>} : memref<64x32xf32, #tpu.memory_space<vmem>>, vector<8x32xf32>,
    %c3_i32 = arith.constant 3 : i32
    %c8_i32_35 = arith.constant 8 : i32
    %93 = arith.muli %c3_i32, %c8_i32_35 : i32
    %94 = tpu.assume_multiple %93, 8 : i32
    %95 = arith.index_cast %94 : i32 to index
    %c0_36 = arith.constant 0 : index
    %96 = vector.load %arg10[%95, %c0_36] : memref<64x128xf32, #tpu.memory_space<vmem>>, vector<8x128xf32>
    %c0_37 = arith.constant 0 : index
    %c0_38 = arith.constant 0 : index
    %97 = vector.load %arg2[%c0_37, %c0_38] : memref<32x128xf32, #tpu.memory_space<vmem>>, vector<32x128xf32>
    %cst_39 = arith.constant dense<0.000000e+00> : vector<8x128xf32>
    %98 = tpu.matmul %87, %97, %cst_39 {dimension_numbers = #tpu.dot_dimension_numbers<[1], [0], [0], [1], [0, 0, 1, 1], [], []>} : vector<8x32xf32>, vector<32x128xf32>, vector<8x128xf32> -> vector<8x128xf32>
    %99 = arith.addf %96, %98 : vector<8x128xf32>
    %100 = vector.extract_strided_slice %99 {offsets = [0, 0], sizes = [8, 96], strides = [1, 1]} : vector<8x128xf32> to vector<8x96xf32>
    %101 = arith.negf %100 : vector<8x96xf32>
    %102 = math.exp %101 : vector<8x96xf32>
    %cst_40 = arith.constant 1.000000e+00 : f32
    %103 = vector.broadcast %cst_40 : f32 to vector<8x96xf32>
    %104 = arith.addf %103, %102 : vector<8x96xf32>
    %105 = arith.divf %103, %104 : vector<8x96xf32>
    %106 = vector.extract_strided_slice %99 {offsets = [0, 96], sizes = [8, 32], strides = [1, 1]} : vector<8x128xf32> to vector<8x32xf32>
    %107 = math.tanh %106 : vector<8x32xf32>
    %108 = vector.extract_strided_slice %105 {offsets = [0, 32], sizes = [8, 32], strides = [1, 1]} : vector<8x96xf32> to vector<8x32xf32>
    %109 = arith.mulf %108, %84 : vector<8x32xf32>
    %110 = vector.extract_strided_slice %105 {offsets = [0, 0], sizes = [8, 32], strides = [1, 1]} : vector<8x96xf32> to vector<8x32xf32>
    %111 = arith.mulf %110, %107 : vector<8x32xf32>
    %112 = arith.addf %109, %111 : vector<8x32xf32>
    %113 = vector.extract_strided_slice %105 {offsets = [0, 64], sizes = [8, 32], strides = [1, 1]} : vector<8x96xf32> to vector<8x32xf32>
    %114 = math.tanh %112 : vector<8x32xf32>
    %115 = arith.mulf %113, %114 : vector<8x32xf32>
    %c8_i32_41 = arith.constant 8 : i32
    %116 = arith.muli %c3_i32, %c8_i32_41 : i32
    %c0_i32_42 = arith.constant 0 : i32
    %117 = arith.addi %116, %c0_i32_42 : i32
    %118 = tpu.assume_multiple %117, 8 : i32
    %119 = arith.index_cast %118 : i32 to index
    %c0_43 = arith.constant 0 : index
    %120 = vector.load %arg11[%119, %c0_43] : memref<64x32xf32, #tpu.memory_space<vmem>>, vector<8x32xf32>
    tpu.vector_store %arg11[%119, %c0_43], %115 {strides = array<i32>} : memref<64x32xf32, #tpu.memory_space<vmem>>, vector<8x32xf32>,
    %c4_i32 = arith.constant 4 : i32
    %c8_i32_44 = arith.constant 8 : i32
    %121 = arith.muli %c4_i32, %c8_i32_44 : i32
    %122 = tpu.assume_multiple %121, 8 : i32
    %123 = arith.index_cast %122 : i32 to index
    %c0_45 = arith.constant 0 : index
    %124 = vector.load %arg10[%123, %c0_45] : memref<64x128xf32, #tpu.memory_space<vmem>>, vector<8x128xf32>
    %c0_46 = arith.constant 0 : index
    %c0_47 = arith.constant 0 : index
    %125 = vector.load %arg2[%c0_46, %c0_47] : memref<32x128xf32, #tpu.memory_space<vmem>>, vector<32x128xf32>
    %cst_48 = arith.constant dense<0.000000e+00> : vector<8x128xf32>
    %126 = tpu.matmul %115, %125, %cst_48 {dimension_numbers = #tpu.dot_dimension_numbers<[1], [0], [0], [1], [0, 0, 1, 1], [], []>} : vector<8x32xf32>, vector<32x128xf32>, vector<8x128xf32> -> vector<8x128xf32>
    %127 = arith.addf %124, %126 : vector<8x128xf32>
    %128 = vector.extract_strided_slice %127 {offsets = [0, 0], sizes = [8, 96], strides = [1, 1]} : vector<8x128xf32> to vector<8x96xf32>
    %129 = arith.negf %128 : vector<8x96xf32>
    %130 = math.exp %129 : vector<8x96xf32>
    %cst_49 = arith.constant 1.000000e+00 : f32
    %131 = vector.broadcast %cst_49 : f32 to vector<8x96xf32>
    %132 = arith.addf %131, %130 : vector<8x96xf32>
    %133 = arith.divf %131, %132 : vector<8x96xf32>
    %134 = vector.extract_strided_slice %127 {offsets = [0, 96], sizes = [8, 32], strides = [1, 1]} : vector<8x128xf32> to vector<8x32xf32>
    %135 = math.tanh %134 : vector<8x32xf32>
    %136 = vector.extract_strided_slice %133 {offsets = [0, 32], sizes = [8, 32], strides = [1, 1]} : vector<8x96xf32> to vector<8x32xf32>
    %137 = arith.mulf %136, %112 : vector<8x32xf32>
    %138 = vector.extract_strided_slice %133 {offsets = [0, 0], sizes = [8, 32], strides = [1, 1]} : vector<8x96xf32> to vector<8x32xf32>
    %139 = arith.mulf %138, %135 : vector<8x32xf32>
    %140 = arith.addf %137, %139 : vector<8x32xf32>
    %141 = vector.extract_strided_slice %133 {offsets = [0, 64], sizes = [8, 32], strides = [1, 1]} : vector<8x96xf32> to vector<8x32xf32>
    %142 = math.tanh %140 : vector<8x32xf32>
    %143 = arith.mulf %141, %142 : vector<8x32xf32>
    %c8_i32_50 = arith.constant 8 : i32
    %144 = arith.muli %c4_i32, %c8_i32_50 : i32
    %c0_i32_51 = arith.constant 0 : i32
    %145 = arith.addi %144, %c0_i32_51 : i32
    %146 = tpu.assume_multiple %145, 8 : i32
    %147 = arith.index_cast %146 : i32 to index
    %c0_52 = arith.constant 0 : index
    %148 = vector.load %arg11[%147, %c0_52] : memref<64x32xf32, #tpu.memory_space<vmem>>, vector<8x32xf32>
    tpu.vector_store %arg11[%147, %c0_52], %143 {strides = array<i32>} : memref<64x32xf32, #tpu.memory_space<vmem>>, vector<8x32xf32>,
    %c5_i32 = arith.constant 5 : i32
    %c8_i32_53 = arith.constant 8 : i32
    %149 = arith.muli %c5_i32, %c8_i32_53 : i32
    %150 = tpu.assume_multiple %149, 8 : i32
    %151 = arith.index_cast %150 : i32 to index
    %c0_54 = arith.constant 0 : index
    %152 = vector.load %arg10[%151, %c0_54] : memref<64x128xf32, #tpu.memory_space<vmem>>, vector<8x128xf32>
    %c0_55 = arith.constant 0 : index
    %c0_56 = arith.constant 0 : index
    %153 = vector.load %arg2[%c0_55, %c0_56] : memref<32x128xf32, #tpu.memory_space<vmem>>, vector<32x128xf32>
    %cst_57 = arith.constant dense<0.000000e+00> : vector<8x128xf32>
    %154 = tpu.matmul %143, %153, %cst_57 {dimension_numbers = #tpu.dot_dimension_numbers<[1], [0], [0], [1], [0, 0, 1, 1], [], []>} : vector<8x32xf32>, vector<32x128xf32>, vector<8x128xf32> -> vector<8x128xf32>
    %155 = arith.addf %152, %154 : vector<8x128xf32>
    %156 = vector.extract_strided_slice %155 {offsets = [0, 0], sizes = [8, 96], strides = [1, 1]} : vector<8x128xf32> to vector<8x96xf32>
    %157 = arith.negf %156 : vector<8x96xf32>
    %158 = math.exp %157 : vector<8x96xf32>
    %cst_58 = arith.constant 1.000000e+00 : f32
    %159 = vector.broadcast %cst_58 : f32 to vector<8x96xf32>
    %160 = arith.addf %159, %158 : vector<8x96xf32>
    %161 = arith.divf %159, %160 : vector<8x96xf32>
    %162 = vector.extract_strided_slice %155 {offsets = [0, 96], sizes = [8, 32], strides = [1, 1]} : vector<8x128xf32> to vector<8x32xf32>
    %163 = math.tanh %162 : vector<8x32xf32>
    %164 = vector.extract_strided_slice %161 {offsets = [0, 32], sizes = [8, 32], strides = [1, 1]} : vector<8x96xf32> to vector<8x32xf32>
    %165 = arith.mulf %164, %140 : vector<8x32xf32>
    %166 = vector.extract_strided_slice %161 {offsets = [0, 0], sizes = [8, 32], strides = [1, 1]} : vector<8x96xf32> to vector<8x32xf32>
    %167 = arith.mulf %166, %163 : vector<8x32xf32>
    %168 = arith.addf %165, %167 : vector<8x32xf32>
    %169 = vector.extract_strided_slice %161 {offsets = [0, 64], sizes = [8, 32], strides = [1, 1]} : vector<8x96xf32> to vector<8x32xf32>
    %170 = math.tanh %168 : vector<8x32xf32>
    %171 = arith.mulf %169, %170 : vector<8x32xf32>
    %c8_i32_59 = arith.constant 8 : i32
    %172 = arith.muli %c5_i32, %c8_i32_59 : i32
    %c0_i32_60 = arith.constant 0 : i32
    %173 = arith.addi %172, %c0_i32_60 : i32
    %174 = tpu.assume_multiple %173, 8 : i32
    %175 = arith.index_cast %174 : i32 to index
    %c0_61 = arith.constant 0 : index
    %176 = vector.load %arg11[%175, %c0_61] : memref<64x32xf32, #tpu.memory_space<vmem>>, vector<8x32xf32>
    tpu.vector_store %arg11[%175, %c0_61], %171 {strides = array<i32>} : memref<64x32xf32, #tpu.memory_space<vmem>>, vector<8x32xf32>,
    %c6_i32 = arith.constant 6 : i32
    %c8_i32_62 = arith.constant 8 : i32
    %177 = arith.muli %c6_i32, %c8_i32_62 : i32
    %178 = tpu.assume_multiple %177, 8 : i32
    %179 = arith.index_cast %178 : i32 to index
    %c0_63 = arith.constant 0 : index
    %180 = vector.load %arg10[%179, %c0_63] : memref<64x128xf32, #tpu.memory_space<vmem>>, vector<8x128xf32>
    %c0_64 = arith.constant 0 : index
    %c0_65 = arith.constant 0 : index
    %181 = vector.load %arg2[%c0_64, %c0_65] : memref<32x128xf32, #tpu.memory_space<vmem>>, vector<32x128xf32>
    %cst_66 = arith.constant dense<0.000000e+00> : vector<8x128xf32>
    %182 = tpu.matmul %171, %181, %cst_66 {dimension_numbers = #tpu.dot_dimension_numbers<[1], [0], [0], [1], [0, 0, 1, 1], [], []>} : vector<8x32xf32>, vector<32x128xf32>, vector<8x128xf32> -> vector<8x128xf32>
    %183 = arith.addf %180, %182 : vector<8x128xf32>
    %184 = vector.extract_strided_slice %183 {offsets = [0, 0], sizes = [8, 96], strides = [1, 1]} : vector<8x128xf32> to vector<8x96xf32>
    %185 = arith.negf %184 : vector<8x96xf32>
    %186 = math.exp %185 : vector<8x96xf32>
    %cst_67 = arith.constant 1.000000e+00 : f32
    %187 = vector.broadcast %cst_67 : f32 to vector<8x96xf32>
    %188 = arith.addf %187, %186 : vector<8x96xf32>
    %189 = arith.divf %187, %188 : vector<8x96xf32>
    %190 = vector.extract_strided_slice %183 {offsets = [0, 96], sizes = [8, 32], strides = [1, 1]} : vector<8x128xf32> to vector<8x32xf32>
    %191 = math.tanh %190 : vector<8x32xf32>
    %192 = vector.extract_strided_slice %189 {offsets = [0, 32], sizes = [8, 32], strides = [1, 1]} : vector<8x96xf32> to vector<8x32xf32>
    %193 = arith.mulf %192, %168 : vector<8x32xf32>
    %194 = vector.extract_strided_slice %189 {offsets = [0, 0], sizes = [8, 32], strides = [1, 1]} : vector<8x96xf32> to vector<8x32xf32>
    %195 = arith.mulf %194, %191 : vector<8x32xf32>
    %196 = arith.addf %193, %195 : vector<8x32xf32>
    %197 = vector.extract_strided_slice %189 {offsets = [0, 64], sizes = [8, 32], strides = [1, 1]} : vector<8x96xf32> to vector<8x32xf32>
    %198 = math.tanh %196 : vector<8x32xf32>
    %199 = arith.mulf %197, %198 : vector<8x32xf32>
    %c8_i32_68 = arith.constant 8 : i32
    %200 = arith.muli %c6_i32, %c8_i32_68 : i32
    %c0_i32_69 = arith.constant 0 : i32
    %201 = arith.addi %200, %c0_i32_69 : i32
    %202 = tpu.assume_multiple %201, 8 : i32
    %203 = arith.index_cast %202 : i32 to index
    %c0_70 = arith.constant 0 : index
    %204 = vector.load %arg11[%203, %c0_70] : memref<64x32xf32, #tpu.memory_space<vmem>>, vector<8x32xf32>
    tpu.vector_store %arg11[%203, %c0_70], %199 {strides = array<i32>} : memref<64x32xf32, #tpu.memory_space<vmem>>, vector<8x32xf32>,
    %c7_i32 = arith.constant 7 : i32
    %c8_i32_71 = arith.constant 8 : i32
    %205 = arith.muli %c7_i32, %c8_i32_71 : i32
    %206 = tpu.assume_multiple %205, 8 : i32
    %207 = arith.index_cast %206 : i32 to index
    %c0_72 = arith.constant 0 : index
    %208 = vector.load %arg10[%207, %c0_72] : memref<64x128xf32, #tpu.memory_space<vmem>>, vector<8x128xf32>
    %c0_73 = arith.constant 0 : index
    %c0_74 = arith.constant 0 : index
    %209 = vector.load %arg2[%c0_73, %c0_74] : memref<32x128xf32, #tpu.memory_space<vmem>>, vector<32x128xf32>
    %cst_75 = arith.constant dense<0.000000e+00> : vector<8x128xf32>
    %210 = tpu.matmul %199, %209, %cst_75 {dimension_numbers = #tpu.dot_dimension_numbers<[1], [0], [0], [1], [0, 0, 1, 1], [], []>} : vector<8x32xf32>, vector<32x128xf32>, vector<8x128xf32> -> vector<8x128xf32>
    %211 = arith.addf %208, %210 : vector<8x128xf32>
    %212 = vector.extract_strided_slice %211 {offsets = [0, 0], sizes = [8, 96], strides = [1, 1]} : vector<8x128xf32> to vector<8x96xf32>
    %213 = arith.negf %212 : vector<8x96xf32>
    %214 = math.exp %213 : vector<8x96xf32>
    %cst_76 = arith.constant 1.000000e+00 : f32
    %215 = vector.broadcast %cst_76 : f32 to vector<8x96xf32>
    %216 = arith.addf %215, %214 : vector<8x96xf32>
    %217 = arith.divf %215, %216 : vector<8x96xf32>
    %218 = vector.extract_strided_slice %211 {offsets = [0, 96], sizes = [8, 32], strides = [1, 1]} : vector<8x128xf32> to vector<8x32xf32>
    %219 = math.tanh %218 : vector<8x32xf32>
    %220 = vector.extract_strided_slice %217 {offsets = [0, 32], sizes = [8, 32], strides = [1, 1]} : vector<8x96xf32> to vector<8x32xf32>
    %221 = arith.mulf %220, %196 : vector<8x32xf32>
    %222 = vector.extract_strided_slice %217 {offsets = [0, 0], sizes = [8, 32], strides = [1, 1]} : vector<8x96xf32> to vector<8x32xf32>
    %223 = arith.mulf %222, %219 : vector<8x32xf32>
    %224 = arith.addf %221, %223 : vector<8x32xf32>
    %225 = vector.extract_strided_slice %217 {offsets = [0, 64], sizes = [8, 32], strides = [1, 1]} : vector<8x96xf32> to vector<8x32xf32>
    %226 = math.tanh %224 : vector<8x32xf32>
    %227 = arith.mulf %225, %226 : vector<8x32xf32>
    %c8_i32_77 = arith.constant 8 : i32
    %228 = arith.muli %c7_i32, %c8_i32_77 : i32
    %c0_i32_78 = arith.constant 0 : i32
    %229 = arith.addi %228, %c0_i32_78 : i32
    %230 = tpu.assume_multiple %229, 8 : i32
    %231 = arith.index_cast %230 : i32 to index
    %c0_79 = arith.constant 0 : index
    %232 = vector.load %arg11[%231, %c0_79] : memref<64x32xf32, #tpu.memory_space<vmem>>, vector<8x32xf32>
    tpu.vector_store %arg11[%231, %c0_79], %227 {strides = array<i32>} : memref<64x32xf32, #tpu.memory_space<vmem>>, vector<8x32xf32>,
    %c8_i32_80 = arith.constant 8 : i32
    %c0_81 = arith.constant 0 : index
    %c0_82 = arith.constant 0 : index
    %233 = vector.load %arg6[%c0_81, %c0_82] : memref<1x128xf32, #tpu.memory_space<vmem>>, vector<1x128xf32>
    %cst_83 = arith.constant 0.000000e+00 : f32
    %234 = vector.broadcast %cst_83 : f32 to vector<8x32xf32>
    %cst_84 = arith.constant 0.000000e+00 : f32
    %235 = vector.broadcast %cst_84 : f32 to vector<8x32xf32>
    %c0_85 = arith.constant 0 : index
    %c0_86 = arith.constant 0 : index
    %236 = vector.load %arg11[%c0_85, %c0_86] : memref<64x32xf32, #tpu.memory_space<vmem>>, vector<64x32xf32>
    %c0_87 = arith.constant 0 : index
    %c0_88 = arith.constant 0 : index
    %237 = vector.load %arg4[%c0_87, %c0_88] : memref<32x128xf32, #tpu.memory_space<vmem>>, vector<32x128xf32>
    %cst_89 = arith.constant dense<0.000000e+00> : vector<64x128xf32>
    %238 = tpu.matmul %236, %237, %cst_89 {dimension_numbers = #tpu.dot_dimension_numbers<[1], [0], [0], [1], [0, 0, 1, 1], [], []>} : vector<64x32xf32>, vector<32x128xf32>, vector<64x128xf32> -> vector<64x128xf32>
    %239 = vector.broadcast %233 : vector<1x128xf32> to vector<64x128xf32>
    %240 = arith.addf %238, %239 : vector<64x128xf32>
    %c0_90 = arith.constant 0 : index
    %c0_91 = arith.constant 0 : index
    %241 = vector.load %arg10[%c0_90, %c0_91] : memref<64x128xf32, #tpu.memory_space<vmem>>, vector<64x128xf32>
    tpu.vector_store %arg10[%c0_90, %c0_91], %240 {strides = array<i32>} : memref<64x128xf32, #tpu.memory_space<vmem>>, vector<64x128xf32>,
    %c0_i32_92 = arith.constant 0 : i32
    %c8_i32_93 = arith.constant 8 : i32
    %242 = arith.muli %c0_i32_92, %c8_i32_93 : i32
    %243 = tpu.assume_multiple %242, 8 : i32
    %244 = arith.index_cast %243 : i32 to index
    %c0_94 = arith.constant 0 : index
    %245 = vector.load %arg10[%244, %c0_94] : memref<64x128xf32, #tpu.memory_space<vmem>>, vector<8x128xf32>
    %c0_95 = arith.constant 0 : index
    %c0_96 = arith.constant 0 : index
    %246 = vector.load %arg5[%c0_95, %c0_96] : memref<32x128xf32, #tpu.memory_space<vmem>>, vector<32x128xf32>
    %cst_97 = arith.constant dense<0.000000e+00> : vector<8x128xf32>
    %247 = tpu.matmul %234, %246, %cst_97 {dimension_numbers = #tpu.dot_dimension_numbers<[1], [0], [0], [1], [0, 0, 1, 1], [], []>} : vector<8x32xf32>, vector<32x128xf32>, vector<8x128xf32> -> vector<8x128xf32>
    %248 = arith.addf %245, %247 : vector<8x128xf32>
    %249 = vector.extract_strided_slice %248 {offsets = [0, 0], sizes = [8, 96], strides = [1, 1]} : vector<8x128xf32> to vector<8x96xf32>
    %250 = arith.negf %249 : vector<8x96xf32>
    %251 = math.exp %250 : vector<8x96xf32>
    %cst_98 = arith.constant 1.000000e+00 : f32
    %252 = vector.broadcast %cst_98 : f32 to vector<8x96xf32>
    %253 = arith.addf %252, %251 : vector<8x96xf32>
    %254 = arith.divf %252, %253 : vector<8x96xf32>
    %255 = vector.extract_strided_slice %248 {offsets = [0, 96], sizes = [8, 32], strides = [1, 1]} : vector<8x128xf32> to vector<8x32xf32>
    %256 = math.tanh %255 : vector<8x32xf32>
    %257 = vector.extract_strided_slice %254 {offsets = [0, 32], sizes = [8, 32], strides = [1, 1]} : vector<8x96xf32> to vector<8x32xf32>
    %258 = arith.mulf %257, %235 : vector<8x32xf32>
    %259 = vector.extract_strided_slice %254 {offsets = [0, 0], sizes = [8, 32], strides = [1, 1]} : vector<8x96xf32> to vector<8x32xf32>
    %260 = arith.mulf %259, %256 : vector<8x32xf32>
    %261 = arith.addf %258, %260 : vector<8x32xf32>
    %262 = vector.extract_strided_slice %254 {offsets = [0, 64], sizes = [8, 32], strides = [1, 1]} : vector<8x96xf32> to vector<8x32xf32>
    %263 = math.tanh %261 : vector<8x32xf32>
    %264 = arith.mulf %262, %263 : vector<8x32xf32>
    %c1_i32_99 = arith.constant 1 : i32
    %c8_i32_100 = arith.constant 8 : i32
    %265 = arith.muli %c1_i32_99, %c8_i32_100 : i32
    %266 = tpu.assume_multiple %265, 8 : i32
    %267 = arith.index_cast %266 : i32 to index
    %c0_101 = arith.constant 0 : index
    %268 = vector.load %arg10[%267, %c0_101] : memref<64x128xf32, #tpu.memory_space<vmem>>, vector<8x128xf32>
    %c0_102 = arith.constant 0 : index
    %c0_103 = arith.constant 0 : index
    %269 = vector.load %arg5[%c0_102, %c0_103] : memref<32x128xf32, #tpu.memory_space<vmem>>, vector<32x128xf32>
    %cst_104 = arith.constant dense<0.000000e+00> : vector<8x128xf32>
    %270 = tpu.matmul %264, %269, %cst_104 {dimension_numbers = #tpu.dot_dimension_numbers<[1], [0], [0], [1], [0, 0, 1, 1], [], []>} : vector<8x32xf32>, vector<32x128xf32>, vector<8x128xf32> -> vector<8x128xf32>
    %271 = arith.addf %268, %270 : vector<8x128xf32>
    %272 = vector.extract_strided_slice %271 {offsets = [0, 0], sizes = [8, 96], strides = [1, 1]} : vector<8x128xf32> to vector<8x96xf32>
    %273 = arith.negf %272 : vector<8x96xf32>
    %274 = math.exp %273 : vector<8x96xf32>
    %cst_105 = arith.constant 1.000000e+00 : f32
    %275 = vector.broadcast %cst_105 : f32 to vector<8x96xf32>
    %276 = arith.addf %275, %274 : vector<8x96xf32>
    %277 = arith.divf %275, %276 : vector<8x96xf32>
    %278 = vector.extract_strided_slice %271 {offsets = [0, 96], sizes = [8, 32], strides = [1, 1]} : vector<8x128xf32> to vector<8x32xf32>
    %279 = math.tanh %278 : vector<8x32xf32>
    %280 = vector.extract_strided_slice %277 {offsets = [0, 32], sizes = [8, 32], strides = [1, 1]} : vector<8x96xf32> to vector<8x32xf32>
    %281 = arith.mulf %280, %261 : vector<8x32xf32>
    %282 = vector.extract_strided_slice %277 {offsets = [0, 0], sizes = [8, 32], strides = [1, 1]} : vector<8x96xf32> to vector<8x32xf32>
    %283 = arith.mulf %282, %279 : vector<8x32xf32>
    %284 = arith.addf %281, %283 : vector<8x32xf32>
    %285 = vector.extract_strided_slice %277 {offsets = [0, 64], sizes = [8, 32], strides = [1, 1]} : vector<8x96xf32> to vector<8x32xf32>
    %286 = math.tanh %284 : vector<8x32xf32>
    %287 = arith.mulf %285, %286 : vector<8x32xf32>
    %c2_i32_106 = arith.constant 2 : i32
    %c8_i32_107 = arith.constant 8 : i32
    %288 = arith.muli %c2_i32_106, %c8_i32_107 : i32
    %289 = tpu.assume_multiple %288, 8 : i32
    %290 = arith.index_cast %289 : i32 to index
    %c0_108 = arith.constant 0 : index
    %291 = vector.load %arg10[%290, %c0_108] : memref<64x128xf32, #tpu.memory_space<vmem>>, vector<8x128xf32>
    %c0_109 = arith.constant 0 : index
    %c0_110 = arith.constant 0 : index
    %292 = vector.load %arg5[%c0_109, %c0_110] : memref<32x128xf32, #tpu.memory_space<vmem>>, vector<32x128xf32>
    %cst_111 = arith.constant dense<0.000000e+00> : vector<8x128xf32>
    %293 = tpu.matmul %287, %292, %cst_111 {dimension_numbers = #tpu.dot_dimension_numbers<[1], [0], [0], [1], [0, 0, 1, 1], [], []>} : vector<8x32xf32>, vector<32x128xf32>, vector<8x128xf32> -> vector<8x128xf32>
    %294 = arith.addf %291, %293 : vector<8x128xf32>
    %295 = vector.extract_strided_slice %294 {offsets = [0, 0], sizes = [8, 96], strides = [1, 1]} : vector<8x128xf32> to vector<8x96xf32>
    %296 = arith.negf %295 : vector<8x96xf32>
    %297 = math.exp %296 : vector<8x96xf32>
    %cst_112 = arith.constant 1.000000e+00 : f32
    %298 = vector.broadcast %cst_112 : f32 to vector<8x96xf32>
    %299 = arith.addf %298, %297 : vector<8x96xf32>
    %300 = arith.divf %298, %299 : vector<8x96xf32>
    %301 = vector.extract_strided_slice %294 {offsets = [0, 96], sizes = [8, 32], strides = [1, 1]} : vector<8x128xf32> to vector<8x32xf32>
    %302 = math.tanh %301 : vector<8x32xf32>
    %303 = vector.extract_strided_slice %300 {offsets = [0, 32], sizes = [8, 32], strides = [1, 1]} : vector<8x96xf32> to vector<8x32xf32>
    %304 = arith.mulf %303, %284 : vector<8x32xf32>
    %305 = vector.extract_strided_slice %300 {offsets = [0, 0], sizes = [8, 32], strides = [1, 1]} : vector<8x96xf32> to vector<8x32xf32>
    %306 = arith.mulf %305, %302 : vector<8x32xf32>
    %307 = arith.addf %304, %306 : vector<8x32xf32>
    %308 = vector.extract_strided_slice %300 {offsets = [0, 64], sizes = [8, 32], strides = [1, 1]} : vector<8x96xf32> to vector<8x32xf32>
    %309 = math.tanh %307 : vector<8x32xf32>
    %310 = arith.mulf %308, %309 : vector<8x32xf32>
    %c3_i32_113 = arith.constant 3 : i32
    %c8_i32_114 = arith.constant 8 : i32
    %311 = arith.muli %c3_i32_113, %c8_i32_114 : i32
    %312 = tpu.assume_multiple %311, 8 : i32
    %313 = arith.index_cast %312 : i32 to index
    %c0_115 = arith.constant 0 : index
    %314 = vector.load %arg10[%313, %c0_115] : memref<64x128xf32, #tpu.memory_space<vmem>>, vector<8x128xf32>
    %c0_116 = arith.constant 0 : index
    %c0_117 = arith.constant 0 : index
    %315 = vector.load %arg5[%c0_116, %c0_117] : memref<32x128xf32, #tpu.memory_space<vmem>>, vector<32x128xf32>
    %cst_118 = arith.constant dense<0.000000e+00> : vector<8x128xf32>
    %316 = tpu.matmul %310, %315, %cst_118 {dimension_numbers = #tpu.dot_dimension_numbers<[1], [0], [0], [1], [0, 0, 1, 1], [], []>} : vector<8x32xf32>, vector<32x128xf32>, vector<8x128xf32> -> vector<8x128xf32>
    %317 = arith.addf %314, %316 : vector<8x128xf32>
    %318 = vector.extract_strided_slice %317 {offsets = [0, 0], sizes = [8, 96], strides = [1, 1]} : vector<8x128xf32> to vector<8x96xf32>
    %319 = arith.negf %318 : vector<8x96xf32>
    %320 = math.exp %319 : vector<8x96xf32>
    %cst_119 = arith.constant 1.000000e+00 : f32
    %321 = vector.broadcast %cst_119 : f32 to vector<8x96xf32>
    %322 = arith.addf %321, %320 : vector<8x96xf32>
    %323 = arith.divf %321, %322 : vector<8x96xf32>
    %324 = vector.extract_strided_slice %317 {offsets = [0, 96], sizes = [8, 32], strides = [1, 1]} : vector<8x128xf32> to vector<8x32xf32>
    %325 = math.tanh %324 : vector<8x32xf32>
    %326 = vector.extract_strided_slice %323 {offsets = [0, 32], sizes = [8, 32], strides = [1, 1]} : vector<8x96xf32> to vector<8x32xf32>
    %327 = arith.mulf %326, %307 : vector<8x32xf32>
    %328 = vector.extract_strided_slice %323 {offsets = [0, 0], sizes = [8, 32], strides = [1, 1]} : vector<8x96xf32> to vector<8x32xf32>
    %329 = arith.mulf %328, %325 : vector<8x32xf32>
    %330 = arith.addf %327, %329 : vector<8x32xf32>
    %331 = vector.extract_strided_slice %323 {offsets = [0, 64], sizes = [8, 32], strides = [1, 1]} : vector<8x96xf32> to vector<8x32xf32>
    %332 = math.tanh %330 : vector<8x32xf32>
    %333 = arith.mulf %331, %332 : vector<8x32xf32>
    %c4_i32_120 = arith.constant 4 : i32
    %c8_i32_121 = arith.constant 8 : i32
    %334 = arith.muli %c4_i32_120, %c8_i32_121 : i32
    %335 = tpu.assume_multiple %334, 8 : i32
    %336 = arith.index_cast %335 : i32 to index
    %c0_122 = arith.constant 0 : index
    %337 = vector.load %arg10[%336, %c0_122] : memref<64x128xf32, #tpu.memory_space<vmem>>, vector<8x128xf32>
    %c0_123 = arith.constant 0 : index
    %c0_124 = arith.constant 0 : index
    %338 = vector.load %arg5[%c0_123, %c0_124] : memref<32x128xf32, #tpu.memory_space<vmem>>, vector<32x128xf32>
    %cst_125 = arith.constant dense<0.000000e+00> : vector<8x128xf32>
    %339 = tpu.matmul %333, %338, %cst_125 {dimension_numbers = #tpu.dot_dimension_numbers<[1], [0], [0], [1], [0, 0, 1, 1], [], []>} : vector<8x32xf32>, vector<32x128xf32>, vector<8x128xf32> -> vector<8x128xf32>
    %340 = arith.addf %337, %339 : vector<8x128xf32>
    %341 = vector.extract_strided_slice %340 {offsets = [0, 0], sizes = [8, 96], strides = [1, 1]} : vector<8x128xf32> to vector<8x96xf32>
    %342 = arith.negf %341 : vector<8x96xf32>
    %343 = math.exp %342 : vector<8x96xf32>
    %cst_126 = arith.constant 1.000000e+00 : f32
    %344 = vector.broadcast %cst_126 : f32 to vector<8x96xf32>
    %345 = arith.addf %344, %343 : vector<8x96xf32>
    %346 = arith.divf %344, %345 : vector<8x96xf32>
    %347 = vector.extract_strided_slice %340 {offsets = [0, 96], sizes = [8, 32], strides = [1, 1]} : vector<8x128xf32> to vector<8x32xf32>
    %348 = math.tanh %347 : vector<8x32xf32>
    %349 = vector.extract_strided_slice %346 {offsets = [0, 32], sizes = [8, 32], strides = [1, 1]} : vector<8x96xf32> to vector<8x32xf32>
    %350 = arith.mulf %349, %330 : vector<8x32xf32>
    %351 = vector.extract_strided_slice %346 {offsets = [0, 0], sizes = [8, 32], strides = [1, 1]} : vector<8x96xf32> to vector<8x32xf32>
    %352 = arith.mulf %351, %348 : vector<8x32xf32>
    %353 = arith.addf %350, %352 : vector<8x32xf32>
    %354 = vector.extract_strided_slice %346 {offsets = [0, 64], sizes = [8, 32], strides = [1, 1]} : vector<8x96xf32> to vector<8x32xf32>
    %355 = math.tanh %353 : vector<8x32xf32>
    %356 = arith.mulf %354, %355 : vector<8x32xf32>
    %c5_i32_127 = arith.constant 5 : i32
    %c8_i32_128 = arith.constant 8 : i32
    %357 = arith.muli %c5_i32_127, %c8_i32_128 : i32
    %358 = tpu.assume_multiple %357, 8 : i32
    %359 = arith.index_cast %358 : i32 to index
    %c0_129 = arith.constant 0 : index
    %360 = vector.load %arg10[%359, %c0_129] : memref<64x128xf32, #tpu.memory_space<vmem>>, vector<8x128xf32>
    %c0_130 = arith.constant 0 : index
    %c0_131 = arith.constant 0 : index
    %361 = vector.load %arg5[%c0_130, %c0_131] : memref<32x128xf32, #tpu.memory_space<vmem>>, vector<32x128xf32>
    %cst_132 = arith.constant dense<0.000000e+00> : vector<8x128xf32>
    %362 = tpu.matmul %356, %361, %cst_132 {dimension_numbers = #tpu.dot_dimension_numbers<[1], [0], [0], [1], [0, 0, 1, 1], [], []>} : vector<8x32xf32>, vector<32x128xf32>, vector<8x128xf32> -> vector<8x128xf32>
    %363 = arith.addf %360, %362 : vector<8x128xf32>
    %364 = vector.extract_strided_slice %363 {offsets = [0, 0], sizes = [8, 96], strides = [1, 1]} : vector<8x128xf32> to vector<8x96xf32>
    %365 = arith.negf %364 : vector<8x96xf32>
    %366 = math.exp %365 : vector<8x96xf32>
    %cst_133 = arith.constant 1.000000e+00 : f32
    %367 = vector.broadcast %cst_133 : f32 to vector<8x96xf32>
    %368 = arith.addf %367, %366 : vector<8x96xf32>
    %369 = arith.divf %367, %368 : vector<8x96xf32>
    %370 = vector.extract_strided_slice %363 {offsets = [0, 96], sizes = [8, 32], strides = [1, 1]} : vector<8x128xf32> to vector<8x32xf32>
    %371 = math.tanh %370 : vector<8x32xf32>
    %372 = vector.extract_strided_slice %369 {offsets = [0, 32], sizes = [8, 32], strides = [1, 1]} : vector<8x96xf32> to vector<8x32xf32>
    %373 = arith.mulf %372, %353 : vector<8x32xf32>
    %374 = vector.extract_strided_slice %369 {offsets = [0, 0], sizes = [8, 32], strides = [1, 1]} : vector<8x96xf32> to vector<8x32xf32>
    %375 = arith.mulf %374, %371 : vector<8x32xf32>
    %376 = arith.addf %373, %375 : vector<8x32xf32>
    %377 = vector.extract_strided_slice %369 {offsets = [0, 64], sizes = [8, 32], strides = [1, 1]} : vector<8x96xf32> to vector<8x32xf32>
    %378 = math.tanh %376 : vector<8x32xf32>
    %379 = arith.mulf %377, %378 : vector<8x32xf32>
    %c6_i32_134 = arith.constant 6 : i32
    %c8_i32_135 = arith.constant 8 : i32
    %380 = arith.muli %c6_i32_134, %c8_i32_135 : i32
    %381 = tpu.assume_multiple %380, 8 : i32
    %382 = arith.index_cast %381 : i32 to index
    %c0_136 = arith.constant 0 : index
    %383 = vector.load %arg10[%382, %c0_136] : memref<64x128xf32, #tpu.memory_space<vmem>>, vector<8x128xf32>
    %c0_137 = arith.constant 0 : index
    %c0_138 = arith.constant 0 : index
    %384 = vector.load %arg5[%c0_137, %c0_138] : memref<32x128xf32, #tpu.memory_space<vmem>>, vector<32x128xf32>
    %cst_139 = arith.constant dense<0.000000e+00> : vector<8x128xf32>
    %385 = tpu.matmul %379, %384, %cst_139 {dimension_numbers = #tpu.dot_dimension_numbers<[1], [0], [0], [1], [0, 0, 1, 1], [], []>} : vector<8x32xf32>, vector<32x128xf32>, vector<8x128xf32> -> vector<8x128xf32>
    %386 = arith.addf %383, %385 : vector<8x128xf32>
    %387 = vector.extract_strided_slice %386 {offsets = [0, 0], sizes = [8, 96], strides = [1, 1]} : vector<8x128xf32> to vector<8x96xf32>
    %388 = arith.negf %387 : vector<8x96xf32>
    %389 = math.exp %388 : vector<8x96xf32>
    %cst_140 = arith.constant 1.000000e+00 : f32
    %390 = vector.broadcast %cst_140 : f32 to vector<8x96xf32>
    %391 = arith.addf %390, %389 : vector<8x96xf32>
    %392 = arith.divf %390, %391 : vector<8x96xf32>
    %393 = vector.extract_strided_slice %386 {offsets = [0, 96], sizes = [8, 32], strides = [1, 1]} : vector<8x128xf32> to vector<8x32xf32>
    %394 = math.tanh %393 : vector<8x32xf32>
    %395 = vector.extract_strided_slice %392 {offsets = [0, 32], sizes = [8, 32], strides = [1, 1]} : vector<8x96xf32> to vector<8x32xf32>
    %396 = arith.mulf %395, %376 : vector<8x32xf32>
    %397 = vector.extract_strided_slice %392 {offsets = [0, 0], sizes = [8, 32], strides = [1, 1]} : vector<8x96xf32> to vector<8x32xf32>
    %398 = arith.mulf %397, %394 : vector<8x32xf32>
    %399 = arith.addf %396, %398 : vector<8x32xf32>
    %400 = vector.extract_strided_slice %392 {offsets = [0, 64], sizes = [8, 32], strides = [1, 1]} : vector<8x96xf32> to vector<8x32xf32>
    %401 = math.tanh %399 : vector<8x32xf32>
    %402 = arith.mulf %400, %401 : vector<8x32xf32>
    %c7_i32_141 = arith.constant 7 : i32
    %c8_i32_142 = arith.constant 8 : i32
    %403 = arith.muli %c7_i32_141, %c8_i32_142 : i32
    %404 = tpu.assume_multiple %403, 8 : i32
    %405 = arith.index_cast %404 : i32 to index
    %c0_143 = arith.constant 0 : index
    %406 = vector.load %arg10[%405, %c0_143] : memref<64x128xf32, #tpu.memory_space<vmem>>, vector<8x128xf32>
    %c0_144 = arith.constant 0 : index
    %c0_145 = arith.constant 0 : index
    %407 = vector.load %arg5[%c0_144, %c0_145] : memref<32x128xf32, #tpu.memory_space<vmem>>, vector<32x128xf32>
    %cst_146 = arith.constant dense<0.000000e+00> : vector<8x128xf32>
    %408 = tpu.matmul %402, %407, %cst_146 {dimension_numbers = #tpu.dot_dimension_numbers<[1], [0], [0], [1], [0, 0, 1, 1], [], []>} : vector<8x32xf32>, vector<32x128xf32>, vector<8x128xf32> -> vector<8x128xf32>
    %409 = arith.addf %406, %408 : vector<8x128xf32>
    %410 = vector.extract_strided_slice %409 {offsets = [0, 0], sizes = [8, 96], strides = [1, 1]} : vector<8x128xf32> to vector<8x96xf32>
    %411 = arith.negf %410 : vector<8x96xf32>
    %412 = math.exp %411 : vector<8x96xf32>
    %cst_147 = arith.constant 1.000000e+00 : f32
    %413 = vector.broadcast %cst_147 : f32 to vector<8x96xf32>
    %414 = arith.addf %413, %412 : vector<8x96xf32>
    %415 = arith.divf %413, %414 : vector<8x96xf32>
    %416 = vector.extract_strided_slice %409 {offsets = [0, 96], sizes = [8, 32], strides = [1, 1]} : vector<8x128xf32> to vector<8x32xf32>
    %417 = math.tanh %416 : vector<8x32xf32>
    %418 = vector.extract_strided_slice %415 {offsets = [0, 32], sizes = [8, 32], strides = [1, 1]} : vector<8x96xf32> to vector<8x32xf32>
    %419 = arith.mulf %418, %399 : vector<8x32xf32>
    %420 = vector.extract_strided_slice %415 {offsets = [0, 0], sizes = [8, 32], strides = [1, 1]} : vector<8x96xf32> to vector<8x32xf32>
    %421 = arith.mulf %420, %417 : vector<8x32xf32>
    %422 = arith.addf %419, %421 : vector<8x32xf32>
    %423 = vector.extract_strided_slice %415 {offsets = [0, 64], sizes = [8, 32], strides = [1, 1]} : vector<8x96xf32> to vector<8x32xf32>
    %424 = math.tanh %422 : vector<8x32xf32>
    %425 = arith.mulf %423, %424 : vector<8x32xf32>
    %c8_i32_148 = arith.constant 8 : i32
    %c0_149 = arith.constant 0 : index
    %c0_150 = arith.constant 0 : index
    %426 = vector.load %arg7[%c0_149, %c0_150] : memref<32x8xf32, #tpu.memory_space<vmem>>, vector<32x8xf32>
    %cst_151 = arith.constant dense<0.000000e+00> : vector<8x8xf32>
    %427 = tpu.matmul %425, %426, %cst_151 {dimension_numbers = #tpu.dot_dimension_numbers<[1], [0], [0], [1], [0, 0, 1, 1], [], []>} : vector<8x32xf32>, vector<32x8xf32>, vector<8x8xf32> -> vector<8x8xf32>
    %c0_152 = arith.constant 0 : index
    %c0_153 = arith.constant 0 : index
    %428 = vector.load %arg8[%c0_152, %c0_153] : memref<1x8xf32, #tpu.memory_space<vmem>>, vector<1x8xf32>
    %429 = vector.broadcast %428 : vector<1x8xf32> to vector<8x8xf32>
    %430 = arith.addf %427, %429 : vector<8x8xf32>
    %c0_154 = arith.constant 0 : index
    %c0_155 = arith.constant 0 : index
    %431 = vector.load %arg9[%c0_154, %c0_155] : memref<8x8xf32, #tpu.memory_space<vmem>>, vector<8x8xf32>
    tpu.vector_store %arg9[%c0_154, %c0_155], %430 {strides = array<i32>} : memref<8x8xf32, #tpu.memory_space<vmem>>, vector<8x8xf32>,
    return
  }
}

</mosaic_0001>

<bundles_post_ra>
// kernel: tpu_custom_call.1
= control target key start
LH: loop header
LB: loop body
LE: loop exit
PB: predicated region body
PF: predicated region fallthrough
CT: control target
= control target key end

     0   :  { %vm71_vm0 = vcmask 1043456   ;;  %vm46_vm1 = vcmask 31744   ;;  %s1930_s0 = inlined_call_operand.vmem [shape: f32[64,4], index: 0, kind: input, shape index: {}]   ;;  %s1931_s1 = inlined_call_operand.vmem [shape: f32[4,128], index: 1, kind: input, shape index: {}]   ;;  %s1932_s2 = inlined_call_operand.vmem [shape: f32[32,128], index: 2, kind: input, shape index: {}]   ;;  %s1933_s3 = inlined_call_operand.vmem [shape: f32[1,128], index: 3, kind: input, shape index: {}]   ;;  %s1934_s4 = inlined_call_operand.vmem [shape: f32[32,128], index: 4, kind: input, shape index: {}]   ;;  %s1935_s5 = inlined_call_operand.vmem [shape: f32[32,128], index: 5, kind: input, shape index: {}]   ;;  %s1936_s6 = inlined_call_operand.vmem [shape: f32[1,128], index: 6, kind: input, shape index: {}]   ;;  %s1937_s7 = inlined_call_operand.vmem [shape: f32[32,8], index: 7, kind: input, shape index: {}]   ;;  %s1938_s8 = inlined_call_operand.vmem [shape: f32[1,8], index: 8, kind: input, shape index: {}]   ;;  %s1939_s9 = inlined_call_operand.hbm [shape: f32[8,8], index: 9, kind: output, shape index: {}]  }
   0x1   :  { %v1618_v0 = vld [vmem:[%s1932_s2 + $0x18] sm:$0xff]  ;;  %v1623_v1 = vld [vmem:[%s1932_s2 + $0x10] sm:$0xff]  ;;  %v42_v2 = vld [vmem:[%s1931_s1] sm:$0xf] }
   0x2   :  { %145 = vmatpush.msra.mxu1 %v1618_v0  ;;  %1351 = vmatpush.msk.msra.mxu0 %vm71_vm0, %v42_v2  ;;  %v34_v3 = vld [vmem:[%s1930_s0] sm:$0xff]  ;;  %v1635_v4 = vld [vmem:[%s1932_s2 + $0x8] sm:$0xff] }
   0x3   :  { %1352 = vmatmul.msk.f32.vlgmr.msra.gmra.mxu0 %vm46_vm1, %v34_v3  ;;  %216 = vmatpush.msra.mxu2 %v1618_v0 }
   0x4   :  { %146 = vmatpush.msra.mxu1 %v1623_v1  ;;  %504 = vmatpush.msrb.mxu0 %v1618_v0 }
   0x5   :  { %14 = vsyncpa [#allocation5], 0  ;;  %v1644_v5 = vld [vmem:[%s1932_s2] sm:$0xff]  ;;  %217 = vmatpush.msra.mxu2 %v1623_v1  ;;  %v1561_v6 = vmov 0.0   ;;  %s1562_s21 = smov 32   ;;  %s1563_s22 = smov 64  }
   0x6   :  { %147 = vmatpush.msra.mxu1 %v1635_v4  ;;  %505 = vmatpush.msrb.mxu0 %v1623_v1  ;;  %v1670_v7 = vld [vmem:[%s1933_s3] ss:$0 sm:$0xff]  ;;  %v712_v34 = vld [vmem:[%s1934_s4 + $0x18] sm:$0xff]  ;;  %v711_v35 = vld [vmem:[%s1934_s4 + $0x10] sm:$0xff]  ;;  %vm129_vm6 = vcmask 261120   ;;  %s1564_s18 = smov [#allocation4]  }
   0x7   :  { %218 = vmatpush.msra.mxu2 %v1635_v4  ;;  %v35_v36 = vld [vmem:[%s1930_s0 + $0x8] sm:$0xff]  ;;  %752 = vmatpush.msra.mxu3 %v712_v34  ;;  %v709_v38 = vld [vmem:[%s1934_s4] sm:$0xff]  ;;  %s1340_s1 = sshll.u32 %s1564_s18, 4  ;;  %s1342_s20 = sshll.u32 %s1939_s9, 4  ;;  %s1341_s1 = int_to_ptr.vmem [resolvable:$true] %s1340_s1  ;;  %s1343_s20 = int_to_ptr.hbm [resolvable:$true] %s1342_s20 }
   0x8   :  { %148 = vmatpush.msra.mxu1 %v1644_v5  ;;  %506 = vmatpush.msrb.mxu0 %v1635_v4  ;;  %v710_v37 = vld [vmem:[%s1934_s4 + $0x8] sm:$0xff] }
   0x9   :  { %149 = vmatmul.f32.vlgmr.msra.gmra.mxu1 %v1561_v6  ;;  %219 = vmatpush.msra.mxu2 %v1644_v5 }
   0xa   :  { %360 = vmatpush.msrb.mxu1 %v1618_v0  ;;  %507 = vmatpush.msrb.mxu0 %v1644_v5 }
   0xb   :  { %288 = vmatpush.msrb.mxu2 %v1618_v0  ;;  %1353 = vmatmul.msk.f32.gmra.mxu0 %vm46_vm1, %v35_v36 }
   0xc   :  { %361 = vmatpush.msrb.mxu1 %v1623_v1  ;;  %753 = vmatpush.msra.mxu3 %v711_v35 }
   0xd   :  { %289 = vmatpush.msrb.mxu2 %v1623_v1 }
   0xe   :  { %362 = vmatpush.msrb.mxu1 %v1635_v4  ;;  %754 = vmatpush.msra.mxu3 %v710_v37 }
   0xf   :  { %290 = vmatpush.msrb.mxu2 %v1635_v4 }
  0x10   :  { %363 = vmatpush.msrb.mxu1 %v1644_v5  ;;  %755 = vmatpush.msra.mxu3 %v709_v38 }
  0x11   :  { %291 = vmatpush.msrb.mxu2 %v1644_v5 }
  0x12   :  { %576 = vmatpush.msra.mxu1 %v1618_v0 }
  0x14   :  { %577 = vmatpush.msra.mxu1 %v1623_v1 }
  0x16   :  { %578 = vmatpush.msra.mxu1 %v1635_v4 }
  0x18   :  { %579 = vmatpush.msra.mxu1 %v1644_v5 }
  0x80   :  { %v92_v8 = vpop.f32.mrf.mxu0 }
  0x81   :  { %v93_v9 = vadd.f32 %v1670_v7, %v92_v8 }
  0x86   :  { %v150_v10 = vpop.f32.mrf.mxu1 }
  0x87   :  { %v153_v11 = vadd.f32 %v150_v10, %v93_v9  ;;  %v36_v9 = vld [vmem:[%s1930_s0 + $0x10] sm:$0xff] }
  0x88   :  { %v95_v41 = vpop.f32.mrf.mxu0  ;;  %1354 = vmatmul.msk.f32.gmra.mxu0 %vm46_vm1, %v36_v9 }
  0x89   :  { %1406 = vtanh.f32 %v153_v11  ;;  %v1360_v13 = vmul.f32 -1.442695, %v153_v11  ;;  %v96_v42 = vadd.f32 %v1670_v7, %v95_v41 }
  0x8b   :  { %1408 = vpow2.f32 %v1360_v13 }
  0x8f   :  { %v1407_v12 = vpop.eup %1406 }
  0x90   :  { %176 = vrot.lane.b32.xlu0 %v1407_v12, %s1562_s21 }
  0x91   :  { %v1409_v14 = vpop.eup %1408 }
  0x92   :  { %v157_v15 = vadd.f32 1.0, %v1409_v14 }
  0x94   :  { %1410 = vrcp.f32 %v157_v15  ;;  %v169_v21 = vand.u32 2147483648, %v157_v15  ;;  %vm163_vm3 = vweird.f32 %v157_v15  ;;  %v167_v22 = vand.u32 2147483647, %v157_v15 }
  0x96   :  { %v170_v24 = vor.u32 1.1754944e-38, %v169_v21  ;;  %vm168_vm5 = vcmp.eq.f32.partialorder %v167_v22, 8.507059e+37 }
  0x9a   :  { %v1411_v16 = vpop.eup %1410 }
  0x9b   :  { %v159_v17 = vmul.f32 %v1411_v16, %v157_v15  ;;  %vm164_vm2 = vweird.f32 %v1411_v16 }
  0x9c   :  { %vm165_vm4 = vmor %vm163_vm3, %vm164_vm2 }
  0x9d   :  { %v160_v18 = vsub.f32 1.0, %v159_v17 }
  0x9f   :  { %v161_v19 = vmul.f32 %v1411_v16, %v160_v18 }
  0xa1   :  { %v162_v20 = vadd.f32 %v1411_v16, %v161_v19 }
  0xa3   :  { %v166_v23 = vsel %vm165_vm4, %v1411_v16, %v162_v20 }
  0xa4   :  { %v171_v26 = vsel %vm168_vm5, %v170_v24, %v166_v23 }
  0xa5   :  { %v174_v28 = vmul.f32 0.0, %v171_v26 }
 0x102   :  { %v177_v25 = vpop.permute.xlu0 %176 }
 0x103   :  { %v179_v27 = vmul.f32 %v177_v25, %v171_v26 }
 0x105   :  { %181 = vrot.lane.b32.xlu0 %v179_v27, %s1562_s21  ;;  %v98_v12 = vpop.f32.mrf.mxu0 }
 0x106   :  { %v99_v13 = vadd.f32 %v1670_v7, %v98_v12 }
 0x177   :  { %v182_v29 = vpop.permute.xlu0 %181 }
 0x178   :  { %v184_v30 = vadd.f32 %v182_v29, %v174_v28 }
 0x17a   :  { %1412 = vtanh.f32 %v184_v30 }
 0x180   :  { %v1413_v31 = vpop.eup %1412 }
 0x181   :  { %187 = vrot.lane.b32.xlu1 %v1413_v31, %s1562_s21 }
 0x1f3   :  { %v188_v32 = vpop.permute.xlu1 %187 }
 0x1f4   :  { %v190_v33 = vmul.f32 %v188_v32, %v171_v26  ;;  %v37_v32 = vld [vmem:[%s1930_s0 + $0x18] sm:$0xff] }
 0x1f5   :  { %1355 = vmatmul.msk.f32.gmra.mxu0 %vm46_vm1, %v37_v32 }
 0x1f6   :  { %192 = vrot.lane.b32.xlu1 %v190_v33, %s1563_s22 }
 0x268   :  { %v193_v39 = vpop.permute.xlu1 %192 }
 0x269   :  { %195 = vst.msk [vmem:[#allocation3] sm:$0xff] %vm129_vm6, %v193_v39  ;;  %1361 = vmatmul.msk.f32.vlgmr.msra.gmra.mxu2 %vm129_vm6, %v193_v39 }
 0x26a   :  { %432 = vmatpush.msra.mxu2 %v1618_v0 }
 0x26c   :  { %433 = vmatpush.msra.mxu2 %v1623_v1 }
 0x26e   :  { %434 = vmatpush.msra.mxu2 %v1635_v4 }
 0x270   :  { %v701_v40 = vld [vmem:[#allocation3] sm:$0xff]  ;;  %435 = vmatpush.msra.mxu2 %v1644_v5 }
 0x271   :  { %1375 = vmatmul.msk.f32.vlgmr.msra.gmra.mxu3 %vm129_vm6, %v701_v40 }
 0x272   :  { %v101_v37 = vpop.f32.mrf.mxu0 }
 0x273   :  { %v102_v38 = vadd.f32 %v1670_v7, %v101_v37 }
 0x2ec   :  { %v221_v43 = vpop.f32.mrf.mxu2 }
 0x2ed   :  { %v224_v44 = vadd.f32 %v221_v43, %v96_v42 }
 0x2ef   :  { %1414 = vtanh.f32 %v224_v44  ;;  %v1362_v46 = vmul.f32 -1.442695, %v224_v44 }
 0x2f1   :  { %1416 = vpow2.f32 %v1362_v46 }
 0x2f5   :  { %v1415_v45 = vpop.eup %1414 }
 0x2f6   :  { %247 = vrot.lane.b32.xlu2 %v1415_v45, %s1562_s21 }
 0x2f7   :  { %v1417_v47 = vpop.eup %1416 }
 0x2f8   :  { %v228_v48 = vadd.f32 1.0, %v1417_v47 }
 0x2fa   :  { %1418 = vrcp.f32 %v228_v48  ;;  %v240_v54 = vand.u32 2147483648, %v228_v48  ;;  %vm234_vm8 = vweird.f32 %v228_v48  ;;  %v238_v55 = vand.u32 2147483647, %v228_v48 }
 0x2fc   :  { %v241_v57 = vor.u32 1.1754944e-38, %v240_v54  ;;  %vm239_vm10 = vcmp.eq.f32.partialorder %v238_v55, 8.507059e+37 }
 0x300   :  { %v1419_v49 = vpop.eup %1418 }
 0x301   :  { %v230_v50 = vmul.f32 %v1419_v49, %v228_v48  ;;  %vm235_vm7 = vweird.f32 %v1419_v49 }
 0x302   :  { %vm236_vm9 = vmor %vm234_vm8, %vm235_vm7 }
 0x303   :  { %v231_v51 = vsub.f32 1.0, %v230_v50 }
 0x305   :  { %v232_v52 = vmul.f32 %v1419_v49, %v231_v51 }
 0x307   :  { %v233_v53 = vadd.f32 %v1419_v49, %v232_v52 }
 0x309   :  { %v237_v56 = vsel %vm236_vm9, %v1419_v49, %v233_v53 }
 0x30a   :  { %v242_v59 = vsel %vm239_vm10, %v241_v57, %v237_v56 }
 0x30b   :  { %v245_v61 = vmul.f32 %v242_v59, %v184_v30 }
 0x350   :  { %v248_v58 = vpop.permute.xlu2 %247 }
 0x351   :  { %v250_v60 = vmul.f32 %v248_v58, %v242_v59 }
 0x353   :  { %252 = vrot.lane.b32.xlu2 %v250_v60, %s1562_s21 }
 0x3ad   :  { %v253_v62 = vpop.permute.xlu2 %252 }
 0x3ae   :  { %v255_v63 = vadd.f32 %v253_v62, %v245_v61 }
 0x3b0   :  { %1420 = vtanh.f32 %v255_v63 }
 0x3b6   :  { %v1421_v2 = vpop.eup %1420 }
 0x3b7   :  { %258 = vrot.lane.b32.xlu0 %v1421_v2, %s1562_s21 }
 0x429   :  { %v259_v3 = vpop.permute.xlu0 %258 }
 0x42a   :  { %v261_v8 = vmul.f32 %v259_v3, %v242_v59 }
 0x42c   :  { %263 = vrot.lane.b32.xlu1 %v261_v8, %s1563_s22 }
 0x49e   :  { %v264_v10 = vpop.permute.xlu1 %263 }
 0x49f   :  { %267 = vst.msk [vmem:[#allocation3 + $0x8] sm:$0xff] %vm129_vm6, %v264_v10  ;;  %1363 = vmatmul.msk.f32.vlgmr.msrb.gmra.mxu2 %vm129_vm6, %v264_v10 }
 0x4a0   :  { %648 = vmatpush.msrb.mxu2 %v1618_v0 }
 0x4a2   :  { %649 = vmatpush.msrb.mxu2 %v1623_v1 }
 0x4a4   :  { %650 = vmatpush.msrb.mxu2 %v1635_v4 }
 0x4a6   :  { %v702_v11 = vld [vmem:[#allocation3 + $0x8] sm:$0xff]  ;;  %651 = vmatpush.msrb.mxu2 %v1644_v5 }
 0x4a7   :  { %1376 = vmatmul.msk.f32.gmra.mxu3 %vm129_vm6, %v702_v11 }
 0x522   :  { %v293_v14 = vpop.f32.mrf.mxu2 }
 0x523   :  { %v296_v15 = vadd.f32 %v293_v14, %v99_v13 }
 0x525   :  { %1422 = vtanh.f32 %v296_v15  ;;  %v1364_v17 = vmul.f32 -1.442695, %v296_v15 }
 0x527   :  { %1424 = vpow2.f32 %v1364_v17 }
 0x52b   :  { %v1423_v16 = vpop.eup %1422 }
 0x52c   :  { %319 = vrot.lane.b32.xlu2 %v1423_v16, %s1562_s21 }
 0x52d   :  { %v1425_v0 = vpop.eup %1424 }
 0x52e   :  { %v300_v1 = vadd.f32 1.0, %v1425_v0 }
 0x530   :  { %1426 = vrcp.f32 %v300_v1  ;;  %v312_v21 = vand.u32 2147483648, %v300_v1  ;;  %vm306_vm12 = vweird.f32 %v300_v1  ;;  %v310_v22 = vand.u32 2147483647, %v300_v1 }
 0x532   :  { %v313_v24 = vor.u32 1.1754944e-38, %v312_v21  ;;  %vm311_vm14 = vcmp.eq.f32.partialorder %v310_v22, 8.507059e+37 }
 0x536   :  { %v1427_v4 = vpop.eup %1426 }
 0x537   :  { %v302_v18 = vmul.f32 %v1427_v4, %v300_v1  ;;  %vm307_vm11 = vweird.f32 %v1427_v4 }
 0x538   :  { %vm308_vm13 = vmor %vm306_vm12, %vm307_vm11 }
 0x539   :  { %v303_v19 = vsub.f32 1.0, %v302_v18 }
 0x53b   :  { %v304_v5 = vmul.f32 %v1427_v4, %v303_v19 }
 0x53d   :  { %v305_v20 = vadd.f32 %v1427_v4, %v304_v5 }
 0x53f   :  { %v309_v23 = vsel %vm308_vm13, %v1427_v4, %v305_v20 }
 0x540   :  { %v314_v26 = vsel %vm311_vm14, %v313_v24, %v309_v23 }
 0x541   :  { %v317_v28 = vmul.f32 %v314_v26, %v255_v63  ;;  %v38_v63 = vld [vmem:[%s1930_s0 + $0x20] sm:$0xff] }
 0x542   :  { %1356 = vmatmul.msk.f32.gmra.mxu0 %vm46_vm1, %v38_v63  ;;  %v1775_v63 = vld [vmem:[%s1935_s5 + $0x18] sm:$0xff] }
 0x586   :  { %v320_v25 = vpop.permute.xlu2 %319 }
 0x587   :  { %v322_v27 = vmul.f32 %v320_v25, %v314_v26 }
 0x589   :  { %324 = vrot.lane.b32.xlu0 %v322_v27, %s1562_s21 }
 0x5bf   :  { %v104_v8 = vpop.f32.mrf.mxu0 }
 0x5c0   :  { %v105_v9 = vadd.f32 %v1670_v7, %v104_v8  ;;  %v1794_v8 = vld [vmem:[%s1935_s5] sm:$0xff] }
 0x5fb   :  { %v325_v29 = vpop.permute.xlu0 %324 }
 0x5fc   :  { %v327_v30 = vadd.f32 %v325_v29, %v317_v28  ;;  %v39_v28 = vld [vmem:[%s1930_s0 + $0x28] sm:$0xff]  ;;  %v40_v29 = vld [vmem:[%s1930_s0 + $0x30] sm:$0xff] }
 0x5fd   :  { %1357 = vmatmul.msk.f32.gmra.mxu0 %vm46_vm1, %v39_v28 }
 0x5fe   :  { %1428 = vtanh.f32 %v327_v30 }
 0x604   :  { %v1429_v31 = vpop.eup %1428 }
 0x605   :  { %330 = vrot.lane.b32.xlu1 %v1429_v31, %s1562_s21  ;;  %1358 = vmatmul.msk.f32.gmra.mxu0 %vm46_vm1, %v40_v29 }
 0x677   :  { %v331_v33 = vpop.permute.xlu1 %330 }
 0x678   :  { %v333_v34 = vmul.f32 %v331_v33, %v314_v26 }
 0x67a   :  { %335 = vrot.lane.b32.xlu2 %v333_v34, %s1563_s22 }
 0x6d4   :  { %v336_v35 = vpop.permute.xlu2 %335 }
 0x6d5   :  { %339 = vst.msk [vmem:[#allocation3 + $0x10] sm:$0xff] %vm129_vm6, %v336_v35  ;;  %1365 = vmatmul.msk.f32.vlgmr.msrb.gmra.mxu1 %vm129_vm6, %v336_v35  ;;  %v107_v35 = vpop.f32.mrf.mxu0 }
 0x6d6   :  { %806 = vmatpush.msrb.mxu1 %v1775_v63 }
 0x6dc   :  { %v703_v36 = vld [vmem:[#allocation3 + $0x10] sm:$0xff] }
 0x6dd   :  { %1377 = vmatmul.msk.f32.gmra.mxu3 %vm129_vm6, %v703_v36  ;;  %v1760_v36 = vpop.f32.mrf.mxu0 }
 0x752   :  { %v365_v39 = vpop.f32.mrf.mxu1 }
 0x753   :  { %v368_v40 = vadd.f32 %v365_v39, %v102_v38  ;;  %v108_v38 = vadd.f32 %v1670_v7, %v107_v35 }
 0x755   :  { %1430 = vtanh.f32 %v368_v40  ;;  %v1366_v42 = vmul.f32 -1.442695, %v368_v40 }
 0x757   :  { %1432 = vpow2.f32 %v1366_v42 }
 0x75b   :  { %v1431_v41 = vpop.eup %1430 }
 0x75c   :  { %391 = vrot.lane.b32.xlu0 %v1431_v41, %s1562_s21 }
 0x75d   :  { %v1433_v43 = vpop.eup %1432 }
 0x75e   :  { %v372_v44 = vadd.f32 1.0, %v1433_v43 }
 0x760   :  { %1434 = vrcp.f32 %v372_v44  ;;  %v384_v50 = vand.u32 2147483648, %v372_v44  ;;  %vm378_vm0 = vweird.f32 %v372_v44  ;;  %v382_v51 = vand.u32 2147483647, %v372_v44 }
 0x762   :  { %v385_v53 = vor.u32 1.1754944e-38, %v384_v50  ;;  %vm383_vm3 = vcmp.eq.f32.partialorder %v382_v51, 8.507059e+37 }
 0x766   :  { %v1435_v45 = vpop.eup %1434 }
 0x767   :  { %v374_v46 = vmul.f32 %v1435_v45, %v372_v44  ;;  %vm379_vm15 = vweird.f32 %v1435_v45 }
 0x768   :  { %vm380_vm2 = vmor %vm378_vm0, %vm379_vm15 }
 0x769   :  { %v375_v47 = vsub.f32 1.0, %v374_v46 }
 0x76b   :  { %v376_v48 = vmul.f32 %v1435_v45, %v375_v47 }
 0x76d   :  { %v377_v49 = vadd.f32 %v1435_v45, %v376_v48 }
 0x76f   :  { %v381_v52 = vsel %vm380_vm2, %v1435_v45, %v377_v49 }
 0x770   :  { %v386_v55 = vsel %vm383_vm3, %v385_v53, %v381_v52 }
 0x771   :  { %v389_v57 = vmul.f32 %v386_v55, %v327_v30  ;;  %v41_v30 = vld [vmem:[%s1930_s0 + $0x38] sm:$0xff] }
 0x772   :  { %1359 = vmatmul.msk.f32.gmra.mxu0 %vm46_vm1, %v41_v30 }
 0x7ce   :  { %v392_v54 = vpop.permute.xlu0 %391 }
 0x7cf   :  { %v394_v56 = vmul.f32 %v392_v54, %v386_v55 }
 0x7d1   :  { %396 = vrot.lane.b32.xlu1 %v394_v56, %s1562_s21 }
 0x7ef   :  { %v1762_v37 = vpop.f32.mrf.mxu0 }
 0x843   :  { %v397_v58 = vpop.permute.xlu1 %396 }
 0x844   :  { %v399_v59 = vadd.f32 %v397_v58, %v389_v57 }
 0x846   :  { %1436 = vtanh.f32 %v399_v59 }
 0x84c   :  { %v1437_v60 = vpop.eup %1436 }
 0x84d   :  { %402 = vrot.lane.b32.xlu2 %v1437_v60, %s1562_s21 }
 0x8a7   :  { %v403_v61 = vpop.permute.xlu2 %402 }
 0x8a8   :  { %v405_v62 = vmul.f32 %v403_v61, %v386_v55 }
 0x8aa   :  { %407 = vrot.lane.b32.xlu0 %v405_v62, %s1563_s22 }
 0x91c   :  { %v408_v2 = vpop.permute.xlu0 %407 }
 0x91d   :  { %411 = vst.msk [vmem:[#allocation3 + $0x18] sm:$0xff] %vm129_vm6, %v408_v2  ;;  %1367 = vmatmul.msk.f32.vlgmr.msra.gmra.mxu2 %vm129_vm6, %v408_v2  ;;  %v1780_v2 = vld [vmem:[%s1935_s5 + $0x10] sm:$0xff] }
 0x91e   :  { %870 = vmatpush.msra.mxu2 %v1775_v63  ;;  %807 = vmatpush.msrb.mxu1 %v1780_v2 }
 0x920   :  { %871 = vmatpush.msra.mxu2 %v1780_v2 }
 0x924   :  { %v704_v3 = vld [vmem:[#allocation3 + $0x18] sm:$0xff] }
 0x925   :  { %1378 = vmatmul.msk.f32.gmra.mxu3 %vm129_vm6, %v704_v3  ;;  %v1787_v3 = vld [vmem:[%s1935_s5 + $0x8] sm:$0xff] }
 0x926   :  { %808 = vmatpush.msrb.mxu1 %v1787_v3  ;;  %872 = vmatpush.msra.mxu2 %v1787_v3 }
 0x928   :  { %809 = vmatpush.msrb.mxu1 %v1794_v8  ;;  %873 = vmatpush.msra.mxu2 %v1794_v8 }
 0x9a0   :  { %v437_v10 = vpop.f32.mrf.mxu2 }
 0x9a1   :  { %v440_v11 = vadd.f32 %v437_v10, %v105_v9 }
 0x9a3   :  { %1438 = vtanh.f32 %v440_v11  ;;  %v1368_v13 = vmul.f32 -1.442695, %v440_v11  ;;  %v111_v11 = vadd.f32 %v1670_v7, %v1760_v36 }
 0x9a5   :  { %1440 = vpow2.f32 %v1368_v13 }
 0x9a9   :  { %v1439_v12 = vpop.eup %1438 }
 0x9aa   :  { %463 = vrot.lane.b32.xlu1 %v1439_v12, %s1562_s21 }
 0x9ab   :  { %v1441_v14 = vpop.eup %1440 }
 0x9ac   :  { %v444_v15 = vadd.f32 1.0, %v1441_v14  ;;  %v1817_v14 = vld [vmem:[%s1936_s6] ss:$0 sm:$0xff] }
 0x9ae   :  { %1442 = vrcp.f32 %v444_v15  ;;  %v456_v18 = vand.u32 2147483648, %v444_v15  ;;  %vm450_vm5 = vweird.f32 %v444_v15  ;;  %v454_v19 = vand.u32 2147483647, %v444_v15 }
 0x9b0   :  { %v457_v20 = vor.u32 1.1754944e-38, %v456_v18  ;;  %vm455_vm8 = vcmp.eq.f32.partialorder %v454_v19, 8.507059e+37 }
 0x9b4   :  { %v1443_v16 = vpop.eup %1442 }
 0x9b5   :  { %v446_v17 = vmul.f32 %v1443_v16, %v444_v15  ;;  %vm451_vm4 = vweird.f32 %v1443_v16 }
 0x9b6   :  { %vm452_vm7 = vmor %vm450_vm5, %vm451_vm4 }
 0x9b7   :  { %v447_v0 = vsub.f32 1.0, %v446_v17 }
 0x9b9   :  { %v448_v1 = vmul.f32 %v1443_v16, %v447_v0 }
 0x9bb   :  { %v449_v4 = vadd.f32 %v1443_v16, %v448_v1 }
 0x9bd   :  { %v453_v5 = vsel %vm452_vm7, %v1443_v16, %v449_v4 }
 0x9be   :  { %v458_v22 = vsel %vm455_vm8, %v457_v20, %v453_v5 }
 0x9bf   :  { %v461_v24 = vmul.f32 %v458_v22, %v399_v59 }
 0xa1c   :  { %v464_v21 = vpop.permute.xlu1 %463 }
 0xa1d   :  { %v466_v23 = vmul.f32 %v464_v21, %v458_v22 }
 0xa1f   :  { %468 = vrot.lane.b32.xlu2 %v466_v23, %s1562_s21 }
 0xa79   :  { %v469_v25 = vpop.permute.xlu2 %468 }
 0xa7a   :  { %v471_v26 = vadd.f32 %v469_v25, %v461_v24 }
 0xa7c   :  { %1444 = vtanh.f32 %v471_v26 }
 0xa82   :  { %v1445_v27 = vpop.eup %1444 }
 0xa83   :  { %474 = vrot.lane.b32.xlu0 %v1445_v27, %s1562_s21 }
 0xaf5   :  { %v475_v31 = vpop.permute.xlu0 %474 }
 0xaf6   :  { %v477_v32 = vmul.f32 %v475_v31, %v458_v22 }
 0xaf8   :  { %479 = vrot.lane.b32.xlu1 %v477_v32, %s1563_s22 }
 0xb6a   :  { %v480_v33 = vpop.permute.xlu1 %479 }
 0xb6b   :  { %483 = vst.msk [vmem:[#allocation3 + $0x20] sm:$0xff] %vm129_vm6, %v480_v33  ;;  %1369 = vmatmul.msk.f32.vlgmr.msrb.gmra.mxu0 %vm129_vm6, %v480_v33 }
 0xb72   :  { %v705_v34 = vld [vmem:[#allocation3 + $0x20] sm:$0xff] }
 0xb73   :  { %1379 = vmatmul.msk.f32.gmra.mxu3 %vm129_vm6, %v705_v34 }
 0xbe8   :  { %v509_v39 = vpop.f32.mrf.mxu0 }
 0xbe9   :  { %v512_v40 = vadd.f32 %v509_v39, %v108_v38 }
 0xbeb   :  { %1446 = vtanh.f32 %v512_v40  ;;  %v1370_v42 = vmul.f32 -1.442695, %v512_v40 }
 0xbed   :  { %1448 = vpow2.f32 %v1370_v42 }
 0xbf1   :  { %v1447_v41 = vpop.eup %1446 }
 0xbf2   :  { %535 = vrot.lane.b32.xlu2 %v1447_v41, %s1562_s21 }
 0xbf3   :  { %v1449_v43 = vpop.eup %1448 }
 0xbf4   :  { %v516_v44 = vadd.f32 1.0, %v1449_v43 }
 0xbf6   :  { %1450 = vrcp.f32 %v516_v44  ;;  %v528_v50 = vand.u32 2147483648, %v516_v44  ;;  %vm522_vm9 = vweird.f32 %v516_v44  ;;  %v526_v51 = vand.u32 2147483647, %v516_v44 }
 0xbf8   :  { %v529_v53 = vor.u32 1.1754944e-38, %v528_v50  ;;  %vm527_vm11 = vcmp.eq.f32.partialorder %v526_v51, 8.507059e+37 }
 0xbfc   :  { %v1451_v45 = vpop.eup %1450 }
 0xbfd   :  { %v518_v46 = vmul.f32 %v1451_v45, %v516_v44  ;;  %vm523_vm1 = vweird.f32 %v1451_v45 }
 0xbfe   :  { %vm524_vm10 = vmor %vm522_vm9, %vm523_vm1 }
 0xbff   :  { %v519_v47 = vsub.f32 1.0, %v518_v46 }
 0xc01   :  { %v520_v48 = vmul.f32 %v1451_v45, %v519_v47 }
 0xc03   :  { %v521_v49 = vadd.f32 %v1451_v45, %v520_v48 }
 0xc05   :  { %v525_v52 = vsel %vm524_vm10, %v1451_v45, %v521_v49 }
 0xc06   :  { %v530_v55 = vsel %vm527_vm11, %v529_v53, %v525_v52 }
 0xc07   :  { %v533_v57 = vmul.f32 %v530_v55, %v471_v26 }
 0xc4c   :  { %v536_v54 = vpop.permute.xlu2 %535 }
 0xc4d   :  { %v538_v56 = vmul.f32 %v536_v54, %v530_v55 }
 0xc4f   :  { %540 = vrot.lane.b32.xlu0 %v538_v56, %s1562_s21 }
 0xcc1   :  { %v541_v58 = vpop.permute.xlu0 %540 }
 0xcc2   :  { %v1767_v59 = vadd.f32 %v541_v58, %v533_v57 }
 0xcc4   :  { %1452 = vtanh.f32 %v1767_v59 }
 0xcca   :  { %v1453_v60 = vpop.eup %1452 }
 0xccb   :  { %546 = vrot.lane.b32.xlu1 %v1453_v60, %s1562_s21 }
 0xd3d   :  { %v547_v61 = vpop.permute.xlu1 %546 }
 0xd3e   :  { %v549_v62 = vmul.f32 %v547_v61, %v530_v55 }
 0xd40   :  { %551 = vrot.lane.b32.xlu2 %v549_v62, %s1563_s22 }
 0xd9a   :  { %v552_v9 = vpop.permute.xlu2 %551 }
 0xd9b   :  { %555 = vst.msk [vmem:[#allocation3 + $0x28] sm:$0xff] %vm129_vm6, %v552_v9  ;;  %1371 = vmatmul.msk.f32.vlgmr.msra.gmra.mxu1 %vm129_vm6, %v552_v9 }
 0xd9c   :  { %934 = vmatpush.msra.mxu1 %v1775_v63 }
 0xd9e   :  { %935 = vmatpush.msra.mxu1 %v1780_v2 }
 0xda0   :  { %936 = vmatpush.msra.mxu1 %v1787_v3 }
 0xda2   :  { %v706_v10 = vld [vmem:[#allocation3 + $0x28] sm:$0xff]  ;;  %937 = vmatpush.msra.mxu1 %v1794_v8 }
 0xda3   :  { %1380 = vmatmul.msk.f32.gmra.mxu3 %vm129_vm6, %v706_v10  ;;  %810 = vmatmul.f32.vlgmr.msrb.gmra.mxu1 %v1561_v6  ;;  %v757_v6 = vpop.f32.mrf.mxu3 }
 0xda4   :  { %1062 = vmatpush.msrb.mxu1 %v1775_v63  ;;  %v758_v15 = vadd.f32 %v1817_v14, %v757_v6 }
 0xda6   :  { %1063 = vmatpush.msrb.mxu1 %v1780_v2 }
 0xda8   :  { %1064 = vmatpush.msrb.mxu1 %v1787_v3 }
 0xdaa   :  { %1065 = vmatpush.msrb.mxu1 %v1794_v8 }
 0xdab   :  { %v760_v62 = vpop.f32.mrf.mxu3 }
 0xdac   :  { %v761_v9 = vadd.f32 %v1817_v14, %v760_v62 }
 0xe18   :  { %v581_v12 = vpop.f32.mrf.mxu1 }
 0xe19   :  { %v584_v13 = vadd.f32 %v581_v12, %v111_v11 }
 0xe1b   :  { %1454 = vtanh.f32 %v584_v13  ;;  %v1372_v7 = vmul.f32 -1.442695, %v584_v13 }
 0xe20   :  { %v811_v16 = vpop.f32.mrf.mxu1 }
 0xe21   :  { %v1455_v17 = vpop.eup %1454  ;;  %v814_v0 = vadd.f32 %v811_v16, %v758_v15 }
 0xe22   :  { %607 = vrot.lane.b32.xlu0 %v1455_v17, %s1562_s21 }
 0xe23   :  { %1456 = vtanh.f32 %v814_v0  ;;  %v1383_v4 = vmul.f32 -1.442695, %v814_v0 }
 0xe24   :  { %1458 = vpow2.f32 %v1372_v7 }
 0xe25   :  { %1460 = vpow2.f32 %v1383_v4 }
 0xe29   :  { %v1457_v1 = vpop.eup %1456 }
 0xe2a   :  { %837 = vrot.lane.b32.xlu1 %v1457_v1, %s1562_s21  ;;  %v1459_v18 = vpop.eup %1458 }
 0xe2b   :  { %v588_v19 = vadd.f32 1.0, %v1459_v18  ;;  %v1461_v5 = vpop.eup %1460 }
 0xe2c   :  { %v818_v20 = vadd.f32 1.0, %v1461_v5 }
 0xe2d   :  { %1462 = vrcp.f32 %v588_v19  ;;  %v600_v29 = vand.u32 2147483648, %v588_v19  ;;  %vm594_vm13 = vweird.f32 %v588_v19  ;;  %v598_v30 = vand.u32 2147483647, %v588_v19 }
 0xe2e   :  { %1464 = vrcp.f32 %v818_v20  ;;  %v830_v39 = vand.u32 2147483648, %v818_v20  ;;  %vm824_vm2 = vweird.f32 %v818_v20  ;;  %v828_v40 = vand.u32 2147483647, %v818_v20 }
 0xe2f   :  { %v601_v33 = vor.u32 1.1754944e-38, %v600_v29  ;;  %vm599_vm15 = vcmp.eq.f32.partialorder %v598_v30, 8.507059e+37  ;;  %v763_v30 = vpop.f32.mrf.mxu3 }
 0xe30   :  { %v831_v42 = vor.u32 1.1754944e-38, %v830_v39  ;;  %vm829_vm4 = vcmp.eq.f32.partialorder %v828_v40, 8.507059e+37 }
 0xe33   :  { %v1463_v21 = vpop.eup %1462 }
 0xe34   :  { %v590_v22 = vmul.f32 %v1463_v21, %v588_v19  ;;  %v1465_v24 = vpop.eup %1464  ;;  %vm595_vm12 = vweird.f32 %v1463_v21 }
 0xe35   :  { %v820_v26 = vmul.f32 %v1465_v24, %v818_v20  ;;  %vm596_vm14 = vmor %vm594_vm13, %vm595_vm12  ;;  %vm825_vm0 = vweird.f32 %v1465_v24 }
 0xe36   :  { %v591_v23 = vsub.f32 1.0, %v590_v22  ;;  %vm826_vm3 = vmor %vm824_vm2, %vm825_vm0 }
 0xe37   :  { %v821_v28 = vsub.f32 1.0, %v820_v26 }
 0xe38   :  { %v592_v25 = vmul.f32 %v1463_v21, %v591_v23 }
 0xe39   :  { %v822_v32 = vmul.f32 %v1465_v24, %v821_v28 }
 0xe3a   :  { %v593_v27 = vadd.f32 %v1463_v21, %v592_v25 }
 0xe3b   :  { %v823_v38 = vadd.f32 %v1465_v24, %v822_v32 }
 0xe3c   :  { %v597_v31 = vsel %vm596_vm14, %v1463_v21, %v593_v27 }
 0xe3d   :  { %v602_v35 = vsel %vm599_vm15, %v601_v33, %v597_v31  ;;  %v827_v41 = vsel %vm826_vm3, %v1465_v24, %v823_v38  ;;  %v764_v31 = vadd.f32 %v1817_v14, %v763_v30 }
 0xe3e   :  { %v832_v44 = vsel %vm829_vm4, %v831_v42, %v827_v41  ;;  %v605_v46 = vmul.f32 %v602_v35, %v1767_v59 }
 0xe3f   :  { %v835_v50 = vmul.f32 0.0, %v832_v44 }
 0xe94   :  { %v608_v34 = vpop.permute.xlu0 %607 }
 0xe95   :  { %v610_v36 = vmul.f32 %v608_v34, %v602_v35 }
 0xe97   :  { %612 = vrot.lane.b32.xlu2 %v610_v36, %s1562_s21 }
 0xe9c   :  { %v838_v43 = vpop.permute.xlu1 %837 }
 0xe9d   :  { %v840_v45 = vmul.f32 %v838_v43, %v832_v44 }
 0xe9f   :  { %842 = vrot.lane.b32.xlu0 %v840_v45, %s1562_s21 }
 0xef1   :  { %v613_v47 = vpop.permute.xlu2 %612 }
 0xef2   :  { %v1825_v48 = vadd.f32 %v613_v47, %v605_v46 }
 0xef4   :  { %1466 = vtanh.f32 %v1825_v48 }
 0xefa   :  { %v1467_v49 = vpop.eup %1466 }
 0xefb   :  { %618 = vrot.lane.b32.xlu1 %v1467_v49, %s1562_s21 }
 0xf11   :  { %v843_v51 = vpop.permute.xlu0 %842 }
 0xf12   :  { %v845_v52 = vadd.f32 %v843_v51, %v835_v50 }
 0xf14   :  { %1468 = vtanh.f32 %v845_v52 }
 0xf1a   :  { %v1469_v53 = vpop.eup %1468 }
 0xf1b   :  { %848 = vrot.lane.b32.xlu2 %v1469_v53, %s1562_s21 }
 0xf6d   :  { %v619_v54 = vpop.permute.xlu1 %618 }
 0xf6e   :  { %v621_v55 = vmul.f32 %v619_v54, %v602_v35 }
 0xf70   :  { %623 = vrot.lane.b32.xlu0 %v621_v55, %s1563_s22 }
 0xf75   :  { %v849_v56 = vpop.permute.xlu2 %848 }
 0xf76   :  { %v851_v57 = vmul.f32 %v849_v56, %v832_v44 }
 0xf78   :  { %854 = vrot.lane.b32.xlu1 %v851_v57, %s1563_s22 }
 0xfe2   :  { %v624_v58 = vpop.permute.xlu0 %623 }
 0xfe3   :  { %627 = vst.msk [vmem:[#allocation3 + $0x30] sm:$0xff] %vm129_vm6, %v624_v58  ;;  %1373 = vmatmul.msk.f32.vlgmr.msrb.gmra.mxu2 %vm129_vm6, %v624_v58 }
 0xfe4   :  { %998 = vmatpush.msrb.mxu2 %v1775_v63 }
 0xfe6   :  { %999 = vmatpush.msrb.mxu2 %v1780_v2 }
 0xfe8   :  { %1000 = vmatpush.msrb.mxu2 %v1787_v3 }
 0xfea   :  { %v855_v59 = vpop.permute.xlu1 %854  ;;  %v707_v60 = vld [vmem:[#allocation3 + $0x30] sm:$0xff]  ;;  %1001 = vmatpush.msrb.mxu2 %v1794_v8 }
 0xfeb   :  { %1381 = vmatmul.msk.f32.gmra.mxu3 %vm129_vm6, %v707_v60  ;;  %1384 = vmatmul.msk.f32.vlgmr.msra.gmra.mxu2 %vm129_vm6, %v855_v59  ;;  %v766_v59 = vpop.f32.mrf.mxu3 }
 0xfec   :  { %1126 = vmatpush.msra.mxu2 %v1775_v63  ;;  %v767_v60 = vadd.f32 %v1817_v14, %v766_v59 }
 0xfee   :  { %1127 = vmatpush.msra.mxu2 %v1780_v2 }
 0xff0   :  { %1128 = vmatpush.msra.mxu2 %v1787_v3 }
 0xff2   :  { %1129 = vmatpush.msra.mxu2 %v1794_v8 }
0x1066   :  { %v1844_v61 = vpop.f32.mrf.mxu2 }
0x106e   :  { %v875_v10 = vpop.f32.mrf.mxu2 }
0x106f   :  { %v878_v11 = vadd.f32 %v875_v10, %v761_v9 }
0x1071   :  { %1470 = vtanh.f32 %v878_v11  ;;  %v1385_v13 = vmul.f32 -1.442695, %v878_v11 }
0x1073   :  { %1472 = vpow2.f32 %v1385_v13 }
0x1077   :  { %v1471_v12 = vpop.eup %1470 }
0x1078   :  { %901 = vrot.lane.b32.xlu2 %v1471_v12, %s1562_s21 }
0x1079   :  { %v1473_v6 = vpop.eup %1472 }
0x107a   :  { %v882_v15 = vadd.f32 1.0, %v1473_v6 }
0x107c   :  { %1474 = vrcp.f32 %v882_v15  ;;  %v894_v4 = vand.u32 2147483648, %v882_v15  ;;  %vm888_vm7 = vweird.f32 %v882_v15  ;;  %v892_v18 = vand.u32 2147483647, %v882_v15 }
0x107e   :  { %v895_v5 = vor.u32 1.1754944e-38, %v894_v4  ;;  %vm893_vm1 = vcmp.eq.f32.partialorder %v892_v18, 8.507059e+37 }
0x1082   :  { %v1475_v16 = vpop.eup %1474 }
0x1083   :  { %v884_v17 = vmul.f32 %v1475_v16, %v882_v15  ;;  %vm889_vm5 = vweird.f32 %v1475_v16 }
0x1084   :  { %vm890_vm8 = vmor %vm888_vm7, %vm889_vm5 }
0x1085   :  { %v885_v0 = vsub.f32 1.0, %v884_v17 }
0x1087   :  { %v886_v1 = vmul.f32 %v1475_v16, %v885_v0 }
0x1089   :  { %v887_v7 = vadd.f32 %v1475_v16, %v886_v1 }
0x108b   :  { %v891_v19 = vsel %vm890_vm8, %v1475_v16, %v887_v7 }
0x108c   :  { %v896_v21 = vsel %vm893_vm1, %v895_v5, %v891_v19 }
0x108d   :  { %v899_v23 = vmul.f32 %v896_v21, %v845_v52 }
0x10d2   :  { %v902_v20 = vpop.permute.xlu2 %901 }
0x10d3   :  { %v904_v22 = vmul.f32 %v902_v20, %v896_v21 }
0x10d5   :  { %906 = vrot.lane.b32.xlu0 %v904_v22, %s1562_s21 }
0x1147   :  { %v907_v24 = vpop.permute.xlu0 %906 }
0x1148   :  { %v909_v25 = vadd.f32 %v907_v24, %v899_v23  ;;  %v769_v24 = vpop.f32.mrf.mxu3 }
0x114a   :  { %1476 = vtanh.f32 %v909_v25 }
0x1150   :  { %v1477_v26 = vpop.eup %1476 }
0x1151   :  { %912 = vrot.lane.b32.xlu1 %v1477_v26, %s1562_s21 }
0x11c3   :  { %v913_v27 = vpop.permute.xlu1 %912 }
0x11c4   :  { %v915_v28 = vmul.f32 %v913_v27, %v896_v21 }
0x11c6   :  { %918 = vrot.lane.b32.xlu2 %v915_v28, %s1563_s22 }
0x1220   :  { %v919_v29 = vpop.permute.xlu2 %918 }
0x1221   :  { %1386 = vmatmul.msk.f32.vlgmr.msra.gmra.mxu1 %vm129_vm6, %v919_v29 }
0x1222   :  { %1190 = vmatpush.msra.mxu1 %v1775_v63 }
0x1224   :  { %1191 = vmatpush.msra.mxu1 %v1780_v2 }
0x1226   :  { %1192 = vmatpush.msra.mxu1 %v1787_v3 }
0x1228   :  { %1193 = vmatpush.msra.mxu1 %v1794_v8 }
0x129e   :  { %v939_v32 = vpop.f32.mrf.mxu1 }
0x129f   :  { %v942_v33 = vadd.f32 %v939_v32, %v764_v31 }
0x12a1   :  { %1478 = vtanh.f32 %v942_v33  ;;  %v1387_v35 = vmul.f32 -1.442695, %v942_v33 }
0x12a3   :  { %1480 = vpow2.f32 %v1387_v35 }
0x12a7   :  { %v1479_v34 = vpop.eup %1478 }
0x12a8   :  { %965 = vrot.lane.b32.xlu0 %v1479_v34, %s1562_s21 }
0x12a9   :  { %v1481_v36 = vpop.eup %1480 }
0x12aa   :  { %v946_v38 = vadd.f32 1.0, %v1481_v36 }
0x12ac   :  { %1482 = vrcp.f32 %v946_v38  ;;  %v958_v44 = vand.u32 2147483648, %v946_v38  ;;  %vm952_vm10 = vweird.f32 %v946_v38  ;;  %v956_v45 = vand.u32 2147483647, %v946_v38 }
0x12ae   :  { %v959_v47 = vor.u32 1.1754944e-38, %v958_v44  ;;  %vm957_vm12 = vcmp.eq.f32.partialorder %v956_v45, 8.507059e+37 }
0x12b2   :  { %v1483_v39 = vpop.eup %1482 }
0x12b3   :  { %v948_v40 = vmul.f32 %v1483_v39, %v946_v38  ;;  %vm953_vm9 = vweird.f32 %v1483_v39 }
0x12b4   :  { %vm954_vm11 = vmor %vm952_vm10, %vm953_vm9 }
0x12b5   :  { %v949_v41 = vsub.f32 1.0, %v948_v40 }
0x12b7   :  { %v950_v42 = vmul.f32 %v1483_v39, %v949_v41 }
0x12b9   :  { %v951_v43 = vadd.f32 %v1483_v39, %v950_v42 }
0x12bb   :  { %v955_v46 = vsel %vm954_vm11, %v1483_v39, %v951_v43 }
0x12bc   :  { %v960_v50 = vsel %vm957_vm12, %v959_v47, %v955_v46 }
0x12bd   :  { %v963_v52 = vmul.f32 %v960_v50, %v909_v25  ;;  %v770_v25 = vadd.f32 %v1817_v14, %v769_v24 }
0x131a   :  { %v966_v49 = vpop.permute.xlu0 %965 }
0x131b   :  { %v968_v51 = vmul.f32 %v966_v49, %v960_v50 }
0x131d   :  { %970 = vrot.lane.b32.xlu1 %v968_v51, %s1562_s21 }
0x138f   :  { %v971_v53 = vpop.permute.xlu1 %970 }
0x1390   :  { %v973_v54 = vadd.f32 %v971_v53, %v963_v52  ;;  %v772_v53 = vpop.f32.mrf.mxu3 }
0x1392   :  { %1484 = vtanh.f32 %v973_v54 }
0x1398   :  { %v1485_v55 = vpop.eup %1484 }
0x1399   :  { %976 = vrot.lane.b32.xlu2 %v1485_v55, %s1562_s21 }
0x13f3   :  { %v977_v56 = vpop.permute.xlu2 %976 }
0x13f4   :  { %v979_v57 = vmul.f32 %v977_v56, %v960_v50 }
0x13f6   :  { %982 = vrot.lane.b32.xlu0 %v979_v57, %s1563_s22 }
0x1468   :  { %v983_v58 = vpop.permute.xlu0 %982 }
0x1469   :  { %1388 = vmatmul.msk.f32.vlgmr.msrb.gmra.mxu2 %vm129_vm6, %v983_v58 }
0x146a   :  { %1254 = vmatpush.msrb.mxu2 %v1775_v63 }
0x146c   :  { %1255 = vmatpush.msrb.mxu2 %v1780_v2 }
0x146e   :  { %1256 = vmatpush.msrb.mxu2 %v1787_v3 }
0x1470   :  { %1257 = vmatpush.msrb.mxu2 %v1794_v8 }
0x14ec   :  { %v1003_v62 = vpop.f32.mrf.mxu2 }
0x14ed   :  { %v1006_v9 = vadd.f32 %v1003_v62, %v767_v60 }
0x14ef   :  { %1486 = vtanh.f32 %v1006_v9  ;;  %v1389_v11 = vmul.f32 -1.442695, %v1006_v9 }
0x14f1   :  { %1488 = vpow2.f32 %v1389_v11 }
0x14f5   :  { %v1487_v10 = vpop.eup %1486 }
0x14f6   :  { %1029 = vrot.lane.b32.xlu1 %v1487_v10, %s1562_s21 }
0x14f7   :  { %v1489_v12 = vpop.eup %1488 }
0x14f8   :  { %v1010_v13 = vadd.f32 1.0, %v1489_v12 }
0x14fa   :  { %1490 = vrcp.f32 %v1010_v13  ;;  %v1022_v8 = vand.u32 2147483648, %v1010_v13  ;;  %vm1016_vm14 = vweird.f32 %v1010_v13  ;;  %v1020_v16 = vand.u32 2147483647, %v1010_v13 }
0x14fc   :  { %v1023_v0 = vor.u32 1.1754944e-38, %v1022_v8  ;;  %vm1021_vm0 = vcmp.eq.f32.partialorder %v1020_v16, 8.507059e+37 }
0x1500   :  { %v1491_v63 = vpop.eup %1490 }
0x1501   :  { %v1012_v2 = vmul.f32 %v1491_v63, %v1010_v13  ;;  %vm1017_vm13 = vweird.f32 %v1491_v63 }
0x1502   :  { %vm1018_vm15 = vmor %vm1016_vm14, %vm1017_vm13 }
0x1503   :  { %v1013_v6 = vsub.f32 1.0, %v1012_v2 }
0x1505   :  { %v1014_v3 = vmul.f32 %v1491_v63, %v1013_v6  ;;  %v1534_v6 = vld [vmem:[%s1933_s3] ss:$0 sm:$0xff] }
0x1507   :  { %v1015_v15 = vadd.f32 %v1491_v63, %v1014_v3  ;;  %v114_v3 = vadd.f32 %v1534_v6, %v1762_v37 }
0x1509   :  { %v1019_v17 = vsel %vm1018_vm15, %v1491_v63, %v1015_v15  ;;  %v656_v8 = vadd.f32 %v1844_v61, %v114_v3 }
0x150a   :  { %v1024_v7 = vsel %vm1021_vm0, %v1023_v0, %v1019_v17 }
0x150b   :  { %v1027_v18 = vmul.f32 %v1024_v7, %v973_v54  ;;  %v773_v54 = vadd.f32 %v1817_v14, %v772_v53 }
0x1568   :  { %v1030_v1 = vpop.permute.xlu1 %1029 }
0x1569   :  { %v1032_v4 = vmul.f32 %v1030_v1, %v1024_v7 }
0x156b   :  { %1034 = vrot.lane.b32.xlu2 %v1032_v4, %s1562_s21 }
0x15c5   :  { %v1035_v19 = vpop.permute.xlu2 %1034 }
0x15c6   :  { %v1037_v5 = vadd.f32 %v1035_v19, %v1027_v18  ;;  %v1374_v19 = vmul.f32 -1.442695, %v656_v8 }
0x15c8   :  { %1492 = vtanh.f32 %v1037_v5 }
0x15ce   :  { %v1493_v20 = vpop.eup %1492 }
0x15cf   :  { %1040 = vrot.lane.b32.xlu0 %v1493_v20, %s1562_s21 }
0x1641   :  { %v1041_v21 = vpop.permute.xlu0 %1040 }
0x1642   :  { %v1043_v22 = vmul.f32 %v1041_v21, %v1024_v7 }
0x1644   :  { %1046 = vrot.lane.b32.xlu1 %v1043_v22, %s1563_s22 }
0x16b6   :  { %v1047_v23 = vpop.permute.xlu1 %1046 }
0x16b7   :  { %1390 = vmatmul.msk.f32.vlgmr.msrb.gmra.mxu1 %vm129_vm6, %v1047_v23 }
0x1734   :  { %v1067_v26 = vpop.f32.mrf.mxu1 }
0x1735   :  { %v1070_v27 = vadd.f32 %v1067_v26, %v770_v25 }
0x1737   :  { %1494 = vtanh.f32 %v1070_v27  ;;  %v1391_v29 = vmul.f32 -1.442695, %v1070_v27 }
0x1739   :  { %1496 = vpow2.f32 %v1391_v29 }
0x173d   :  { %v1495_v28 = vpop.eup %1494 }
0x173e   :  { %1093 = vrot.lane.b32.xlu2 %v1495_v28, %s1562_s21 }
0x173f   :  { %v1497_v30 = vpop.eup %1496 }
0x1740   :  { %v1074_v31 = vadd.f32 1.0, %v1497_v30 }
0x1742   :  { %1498 = vrcp.f32 %v1074_v31  ;;  %v1086_v38 = vand.u32 2147483648, %v1074_v31  ;;  %vm1080_vm3 = vweird.f32 %v1074_v31  ;;  %v1084_v39 = vand.u32 2147483647, %v1074_v31 }
0x1744   :  { %v1087_v41 = vor.u32 1.1754944e-38, %v1086_v38  ;;  %vm1085_vm5 = vcmp.eq.f32.partialorder %v1084_v39, 8.507059e+37 }
0x1748   :  { %v1499_v32 = vpop.eup %1498 }
0x1749   :  { %v1076_v33 = vmul.f32 %v1499_v32, %v1074_v31  ;;  %vm1081_vm2 = vweird.f32 %v1499_v32 }
0x174a   :  { %vm1082_vm4 = vmor %vm1080_vm3, %vm1081_vm2 }
0x174b   :  { %v1077_v34 = vsub.f32 1.0, %v1076_v33 }
0x174d   :  { %v1078_v35 = vmul.f32 %v1499_v32, %v1077_v34 }
0x174f   :  { %v1079_v36 = vadd.f32 %v1499_v32, %v1078_v35  ;;  %v775_v35 = vpop.f32.mrf.mxu3 }
0x1751   :  { %v1083_v40 = vsel %vm1082_vm4, %v1499_v32, %v1079_v36  ;;  %v776_v36 = vadd.f32 %v1817_v14, %v775_v35 }
0x1752   :  { %v1088_v43 = vsel %vm1085_vm5, %v1087_v41, %v1083_v40 }
0x1753   :  { %v1091_v45 = vmul.f32 %v1088_v43, %v1037_v5 }
0x1798   :  { %v1094_v42 = vpop.permute.xlu2 %1093 }
0x1799   :  { %v1096_v44 = vmul.f32 %v1094_v42, %v1088_v43 }
0x179b   :  { %1098 = vrot.lane.b32.xlu0 %v1096_v44, %s1562_s21 }
0x180d   :  { %v1099_v46 = vpop.permute.xlu0 %1098 }
0x180e   :  { %v1101_v47 = vadd.f32 %v1099_v46, %v1091_v45 }
0x1810   :  { %1500 = vtanh.f32 %v1101_v47 }
0x1816   :  { %v1501_v49 = vpop.eup %1500 }
0x1817   :  { %1104 = vrot.lane.b32.xlu1 %v1501_v49, %s1562_s21 }
0x1889   :  { %v1105_v50 = vpop.permute.xlu1 %1104 }
0x188a   :  { %v1107_v51 = vmul.f32 %v1105_v50, %v1088_v43 }
0x188c   :  { %1110 = vrot.lane.b32.xlu2 %v1107_v51, %s1563_s22 }
0x18e6   :  { %v1111_v52 = vpop.permute.xlu2 %1110 }
0x18e7   :  { %1392 = vmatmul.msk.f32.vlgmr.msra.gmra.mxu2 %vm129_vm6, %v1111_v52 }
0x196a   :  { %v1131_v55 = vpop.f32.mrf.mxu2 }
0x196b   :  { %v1134_v56 = vadd.f32 %v1131_v55, %v773_v54 }
0x196d   :  { %1502 = vtanh.f32 %v1134_v56  ;;  %v1393_v58 = vmul.f32 -1.442695, %v1134_v56 }
0x196f   :  { %1504 = vpow2.f32 %v1393_v58 }
0x1973   :  { %v1503_v57 = vpop.eup %1502 }
0x1974   :  { %1157 = vrot.lane.b32.xlu0 %v1503_v57, %s1562_s21 }
0x1975   :  { %v1505_v59 = vpop.eup %1504 }
0x1976   :  { %v1138_v60 = vadd.f32 1.0, %v1505_v59 }
0x1978   :  { %1506 = vrcp.f32 %v1138_v60  ;;  %v1150_v13 = vand.u32 2147483648, %v1138_v60  ;;  %vm1144_vm8 = vweird.f32 %v1138_v60  ;;  %v1148_v63 = vand.u32 2147483647, %v1138_v60 }
0x1979   :  { %1508 = vtanh.f32 %v656_v8 }
0x197a   :  { %v1151_v15 = vor.u32 1.1754944e-38, %v1150_v13  ;;  %vm1149_vm9 = vcmp.eq.f32.partialorder %v1148_v63, 8.507059e+37 }
0x197e   :  { %v1507_v62 = vpop.eup %1506 }
0x197f   :  { %v1140_v9 = vmul.f32 %v1507_v62, %v1138_v60  ;;  %vm1145_vm7 = vweird.f32 %v1507_v62  ;;  %v1509_v1 = vpop.eup %1508 }
0x1980   :  { %vm1146_vm1 = vmor %vm1144_vm8, %vm1145_vm7  ;;  %vm1333_vm8 = vcmask 64512  }
0x1981   :  { %v1141_v10 = vsub.f32 1.0, %v1140_v9 }
0x1983   :  { %v1142_v11 = vmul.f32 %v1507_v62, %v1141_v10 }
0x1985   :  { %v1143_v12 = vadd.f32 %v1507_v62, %v1142_v11 }
0x1987   :  { %v1147_v2 = vsel %vm1146_vm1, %v1507_v62, %v1143_v12 }
0x1988   :  { %v1152_v17 = vsel %vm1149_vm9, %v1151_v15, %v1147_v2 }
0x1989   :  { %v1155_v7 = vmul.f32 %v1152_v17, %v1101_v47 }
0x19e6   :  { %v1158_v16 = vpop.permute.xlu0 %1157 }
0x19e7   :  { %v1160_v0 = vmul.f32 %v1158_v16, %v1152_v17 }
0x19e9   :  { %1162 = vrot.lane.b32.xlu1 %v1160_v0, %s1562_s21 }
0x19f1   :  { %679 = vrot.lane.b32.xlu1 %v1509_v1, %s1562_s21 }
0x1a5b   :  { %v1163_v4 = vpop.permute.xlu1 %1162 }
0x1a5c   :  { %v1887_v18 = vadd.f32 %v1163_v4, %v1155_v7 }
0x1a5e   :  { %1510 = vtanh.f32 %v1887_v18 }
0x1a5f   :  { %1512 = vpow2.f32 %v1374_v19 }
0x1a63   :  { %v680_v31 = vpop.permute.xlu1 %679 }
0x1a64   :  { %v1511_v37 = vpop.eup %1510 }
0x1a65   :  { %1168 = vrot.lane.b32.xlu2 %v1511_v37, %s1562_s21  ;;  %v1513_v61 = vpop.eup %1512 }
0x1a66   :  { %v660_v5 = vadd.f32 1.0, %v1513_v61 }
0x1a68   :  { %1514 = vrcp.f32 %v660_v5  ;;  %v672_v27 = vand.u32 2147483648, %v660_v5  ;;  %vm666_vm11 = vweird.f32 %v660_v5  ;;  %v670_v28 = vand.u32 2147483647, %v660_v5 }
0x1a6a   :  { %v673_v30 = vor.u32 1.1754944e-38, %v672_v27  ;;  %vm671_vm13 = vcmp.eq.f32.partialorder %v670_v28, 8.507059e+37 }
0x1a6e   :  { %v1515_v20 = vpop.eup %1514 }
0x1a6f   :  { %v662_v21 = vmul.f32 %v1515_v20, %v660_v5  ;;  %vm667_vm10 = vweird.f32 %v1515_v20 }
0x1a70   :  { %vm668_vm12 = vmor %vm666_vm11, %vm667_vm10 }
0x1a71   :  { %v663_v22 = vsub.f32 1.0, %v662_v21 }
0x1a73   :  { %v664_v23 = vmul.f32 %v1515_v20, %v663_v22 }
0x1a75   :  { %v665_v25 = vadd.f32 %v1515_v20, %v664_v23 }
0x1a77   :  { %v669_v29 = vsel %vm668_vm12, %v1515_v20, %v665_v25 }
0x1a78   :  { %v674_v32 = vsel %vm671_vm13, %v673_v30, %v669_v29  ;;  %v1303_v30 = vld [vmem:[%s1937_s7 + $0x18] sm:$0xff] }
0x1a79   :  { %v682_v33 = vmul.f32 %v680_v31, %v674_v32  ;;  %v677_v41 = vmul.f32 %v674_v32, %v1825_v48  ;;  %v1302_v31 = vld [vmem:[%s1937_s7 + $0x10] sm:$0xff]  ;;  %1325 = vmatpush.msrb.mxu1 %v1303_v30 }
0x1a7b   :  { %1326 = vmatpush.msrb.mxu1 %v1302_v31 }
0x1abf   :  { %v1169_v24 = vpop.permute.xlu2 %1168 }
0x1ac0   :  { %v1171_v26 = vmul.f32 %v1169_v24, %v1152_v17 }
0x1ac2   :  { %1174 = vrot.lane.b32.xlu0 %v1171_v26, %s1563_s22 }
0x1aca   :  { %684 = vrot.lane.b32.xlu0 %v682_v33, %s1562_s21  ;;  %v1300_v33 = vld [vmem:[%s1937_s7] sm:$0xff] }
0x1b34   :  { %v1175_v34 = vpop.permute.xlu0 %1174 }
0x1b35   :  { %1394 = vmatmul.msk.f32.vlgmr.msra.gmra.mxu1 %vm129_vm6, %v1175_v34 }
0x1b3c   :  { %v685_v40 = vpop.permute.xlu0 %684 }
0x1b3d   :  { %v687_v42 = vadd.f32 %v685_v40, %v677_v41 }
0x1bb2   :  { %v1195_v38 = vpop.f32.mrf.mxu1 }
0x1bb3   :  { %v1198_v39 = vadd.f32 %v1195_v38, %v776_v36  ;;  %v1405_v38 = vld [vmem:[%s1938_s8] ss:$0 sm:$0xff] }
0x1bb5   :  { %1516 = vtanh.f32 %v1198_v39  ;;  %v1395_v45 = vmul.f32 -1.442695, %v1198_v39 }
0x1bb6   :  { %1518 = vtanh.f32 %v687_v42 }
0x1bb7   :  { %1520 = vpow2.f32 %v1395_v45 }
0x1bbb   :  { %v1517_v43 = vpop.eup %1516 }
0x1bbc   :  { %1221 = vrot.lane.b32.xlu2 %v1517_v43, %s1562_s21  ;;  %v1519_v44 = vpop.eup %1518 }
0x1bbd   :  { %v1521_v46 = vpop.eup %1520 }
0x1bbe   :  { %v1202_v47 = vadd.f32 1.0, %v1521_v46 }
0x1bc0   :  { %1522 = vrcp.f32 %v1202_v47  ;;  %v1214_v48 = vand.u32 2147483648, %v1202_v47  ;;  %vm1208_vm15 = vweird.f32 %v1202_v47  ;;  %v1212_v54 = vand.u32 2147483647, %v1202_v47 }
0x1bc2   :  { %v1215_v56 = vor.u32 1.1754944e-38, %v1214_v48  ;;  %vm1213_vm2 = vcmp.eq.f32.partialorder %v1212_v54, 8.507059e+37 }
0x1bc4   :  { %690 = vrot.lane.b32.xlu2 %v1519_v44, %s1562_s21 }
0x1bc6   :  { %v1523_v49 = vpop.eup %1522 }
0x1bc7   :  { %v1204_v50 = vmul.f32 %v1523_v49, %v1202_v47  ;;  %vm1209_vm14 = vweird.f32 %v1523_v49 }
0x1bc8   :  { %vm1210_vm0 = vmor %vm1208_vm15, %vm1209_vm14 }
0x1bc9   :  { %v1205_v51 = vsub.f32 1.0, %v1204_v50 }
0x1bcb   :  { %v1206_v52 = vmul.f32 %v1523_v49, %v1205_v51 }
0x1bcd   :  { %v1207_v53 = vadd.f32 %v1523_v49, %v1206_v52 }
0x1bcf   :  { %v1211_v55 = vsel %vm1210_vm0, %v1523_v49, %v1207_v53 }
0x1bd0   :  { %v1216_v58 = vsel %vm1213_vm2, %v1215_v56, %v1211_v55 }
0x1bd1   :  { %v1219_v9 = vmul.f32 %v1216_v58, %v1887_v18 }
0x1c16   :  { %v1222_v57 = vpop.permute.xlu2 %1221 }
0x1c17   :  { %v1224_v59 = vmul.f32 %v1222_v57, %v1216_v58 }
0x1c19   :  { %1226 = vrot.lane.b32.xlu1 %v1224_v59, %s1562_s21 }
0x1c1e   :  { %v691_v60 = vpop.permute.xlu2 %690 }
0x1c1f   :  { %v693_v62 = vmul.f32 %v691_v60, %v674_v32  ;;  %v1301_v32 = vld [vmem:[%s1937_s7 + $0x8] sm:$0xff] }
0x1c20   :  { %1327 = vmatpush.msrb.mxu1 %v1301_v32 }
0x1c21   :  { %695 = vrot.lane.b32.xlu1 %v693_v62, %s1563_s22 }
0x1c22   :  { %1328 = vmatpush.msrb.mxu1 %v1300_v33 }
0x1c8b   :  { %v1227_v10 = vpop.permute.xlu1 %1226 }
0x1c8c   :  { %v1229_v11 = vadd.f32 %v1227_v10, %v1219_v9 }
0x1c8e   :  { %1524 = vtanh.f32 %v1229_v11 }
0x1c93   :  { %v696_v12 = vpop.permute.xlu1 %695 }
0x1c94   :  { %v1525_v13 = vpop.eup %1524  ;;  %699 = vst.msk [vmem:[#allocation3 + $0x38] sm:$0xff] %vm129_vm6, %v696_v12 }
0x1c95   :  { %1232 = vrot.lane.b32.xlu0 %v1525_v13, %s1562_s21 }
0x1c9b   :  { %v708_v63 = vld [vmem:[#allocation3 + $0x38] sm:$0xff] }
0x1c9c   :  { %1382 = vmatmul.msk.f32.gmra.mxu3 %vm129_vm6, %v708_v63 }
0x1d07   :  { %v1233_v2 = vpop.permute.xlu0 %1232 }
0x1d08   :  { %v1235_v6 = vmul.f32 %v1233_v2, %v1216_v58 }
0x1d0a   :  { %1238 = vrot.lane.b32.xlu2 %v1235_v6, %s1563_s22 }
0x1d1f   :  { %v778_v15 = vpop.f32.mrf.mxu3 }
0x1d20   :  { %v779_v8 = vadd.f32 %v1817_v14, %v778_v15 }
0x1d64   :  { %v1239_v3 = vpop.permute.xlu2 %1238 }
0x1d65   :  { %1396 = vmatmul.msk.f32.vlgmr.msrb.gmra.mxu2 %vm129_vm6, %v1239_v3 }
0x1de8   :  { %v1259_v16 = vpop.f32.mrf.mxu2 }
0x1de9   :  { %v1262_v17 = vadd.f32 %v1259_v16, %v779_v8 }
0x1deb   :  { %1526 = vtanh.f32 %v1262_v17  ;;  %v1397_v1 = vmul.f32 -1.442695, %v1262_v17 }
0x1ded   :  { %1528 = vpow2.f32 %v1397_v1 }
0x1df1   :  { %v1527_v0 = vpop.eup %1526 }
0x1df2   :  { %1285 = vrot.lane.b32.xlu0 %v1527_v0, %s1562_s21 }
0x1df3   :  { %v1529_v7 = vpop.eup %1528 }
0x1df4   :  { %v1266_v4 = vadd.f32 1.0, %v1529_v7 }
0x1df6   :  { %1530 = vrcp.f32 %v1266_v4  ;;  %v1278_v20 = vand.u32 2147483648, %v1266_v4  ;;  %vm1272_vm4 = vweird.f32 %v1266_v4  ;;  %v1276_v14 = vand.u32 2147483647, %v1266_v4 }
0x1df8   :  { %v1279_v22 = vor.u32 1.1754944e-38, %v1278_v20  ;;  %vm1277_vm7 = vcmp.eq.f32.partialorder %v1276_v14, 8.507059e+37 }
0x1dfc   :  { %v1531_v18 = vpop.eup %1530 }
0x1dfd   :  { %v1268_v37 = vmul.f32 %v1531_v18, %v1266_v4  ;;  %vm1273_vm3 = vweird.f32 %v1531_v18 }
0x1dfe   :  { %vm1274_vm5 = vmor %vm1272_vm4, %vm1273_vm3 }
0x1dff   :  { %v1269_v19 = vsub.f32 1.0, %v1268_v37 }
0x1e01   :  { %v1270_v61 = vmul.f32 %v1531_v18, %v1269_v19 }
0x1e03   :  { %v1271_v5 = vadd.f32 %v1531_v18, %v1270_v61 }
0x1e05   :  { %v1275_v21 = vsel %vm1274_vm5, %v1531_v18, %v1271_v5 }
0x1e06   :  { %v1280_v24 = vsel %vm1277_vm7, %v1279_v22, %v1275_v21 }
0x1e07   :  { %v1283_v26 = vmul.f32 %v1280_v24, %v1229_v11 }
0x1e64   :  { %v1286_v23 = vpop.permute.xlu0 %1285 }
0x1e65   :  { %v1288_v25 = vmul.f32 %v1286_v23, %v1280_v24 }
0x1e67   :  { %1290 = vrot.lane.b32.xlu1 %v1288_v25, %s1562_s21 }
0x1ed9   :  { %v1291_v27 = vpop.permute.xlu1 %1290 }
0x1eda   :  { %v1293_v28 = vadd.f32 %v1291_v27, %v1283_v26 }
0x1edc   :  { %1532 = vtanh.f32 %v1293_v28 }
0x1ee2   :  { %v1533_v29 = vpop.eup %1532 }
0x1ee3   :  { %1296 = vrot.lane.b32.xlu2 %v1533_v29, %s1562_s21 }
0x1f3d   :  { %v1297_v34 = vpop.permute.xlu2 %1296 }
0x1f3e   :  { %v1299_v35 = vmul.f32 %v1297_v34, %v1280_v24 }
0x1f40   :  { %1309 = vrot.lane.b32.xlu0 %v1299_v35, %s1563_s22 }
0x1fb2   :  { %v1310_v36 = vpop.permute.xlu0 %1309 }
0x1fb3   :  { %1398 = vmatmul.msk.f32.vlgmr.msrb.gmra.mxu1 %vm129_vm6, %v1310_v36 }
0x2030   :  { %v1330_v39 = vpop.f32.mrf.mxu1 }
0x2031   :  { %v1331_v40 = vadd.f32 %v1405_v38, %v1330_v39 }
0x2033   :  { %1334 = vst.msk [vmem:[#allocation4] sm:$0xff] %vm1333_vm8, %v1331_v40 }
0x2034   :  { %1345 = dma.vmem_to_hbm [thread:$0]  %s1341_s1, 128, %s1343_s20, [#allocation5]  }
0x2035   :  { %1559 = dma.done.wait [#allocation5], 128  }
0x2036   :  { %1560 = vsyncadd [#allocation5], 4294967168 }
0x2037   :  { %1350 = vsyncpa [#allocation5], 1 }

</bundles_post_ra>
